<compile_context>
chip_gen: v6e
topology: v6e:2x2x1
jax: 0.10.0
libtpu: 0.0.40
codegen_flags: <defaults>
</compile_context>

<pallas_src>
import functools

import jax
import jax.numpy as jnp
from jax import lax
from jax.experimental import pallas as pl
from jax.experimental.pallas import tpu as pltpu


_MASKED = -1e20            # torch masked_fill value (applied before the /sqrt(E), like torch)
_PAD = -1e30               # padded-key sentinel: strictly below any real (masked) score
_VMEM_LIMIT = 32 * 1024 * 1024


# ----------------------------------------------------------------------------- utilities
def _round_up(x, m):
    return ((x + m - 1) // m) * m


def _pick_div(total, desired):
    """Largest multiple of 128 <= desired that divides total (total is a multiple of 128)."""
    t = min(desired, total)
    while total % t:
        t -= 128
    return t


def _pad_axis(x, target, axis, value=0.0):
    pad = target - x.shape[axis]
    if pad == 0:
        return x
    cfg = [(0, 0)] * x.ndim
    cfg[axis] = (0, pad)
    return jnp.pad(x, cfg, constant_values=value)


def _split_heads(x, num_heads):
    # (N, S, E) -> (N*H, S, D); done in bf16 so the layout shuffle costs half the HBM traffic.
    n, s, e = x.shape
    d = e // num_heads
    return x.reshape(n, s, num_heads, d).transpose(0, 2, 1, 3).reshape(n * num_heads, s, d)


# ----------------------------------------------------------------------------- linear y = x @ W (+ b)
def _linear_kernel(x_ref, w_ref, b_ref, o_ref):
    y = jnp.dot(x_ref[...], w_ref[...], preferred_element_type=jnp.float32)
    o_ref[...] = (y + b_ref[...]).astype(o_ref.dtype)


def _linear(x, w, b, out_dtype, tm_hint=256, tn_hint=1024):
    """x: (rows, in_dim) bf16, w: (in_dim, out_dim) bf16, b: (out_dim,) f32 or None."""
    rows, in_dim = x.shape
    out_dim = w.shape[1]
    rows_p = _round_up(rows, 128)
    out_p = _round_up(out_dim, 128)
    tm = _pick_div(rows_p, tm_hint)
    tn = _pick_div(out_p, tn_hint)          # weight is tiled over out_dim (v7x VMEM safety)

    x_p = _pad_axis(x, rows_p, 0)
    w_p = _pad_axis(w, out_p, 1)
    if b is None:
        b2 = jnp.zeros((1, out_p), jnp.float32)
    else:
        b2 = _pad_axis(jnp.asarray(b, jnp.float32).reshape(1, out_dim), out_p, 1)

    out = pl.pallas_call(
        _linear_kernel,
        out_shape=jax.ShapeDtypeStruct((rows_p, out_p), out_dtype),
        grid_spec=pltpu.PrefetchScalarGridSpec(
            num_scalar_prefetch=0,
            grid=(rows_p // tm, out_p // tn),
            in_specs=[
                pl.BlockSpec((tm, in_dim), lambda i, j: (i, 0)),
                pl.BlockSpec((in_dim, tn), lambda i, j: (0, j)),   # weight tile resident per j
                pl.BlockSpec((1, tn), lambda i, j: (0, j)),
            ],
            out_specs=pl.BlockSpec((tm, tn), lambda i, j: (i, j)),
        ),
        compiler_params=pltpu.CompilerParams(
            dimension_semantics=("parallel", "parallel"),
            vmem_limit_bytes=_VMEM_LIMIT,
        ),
    )(x_p, w_p, b2)
    return out[:rows, :out_dim]


# ----------------------------------------------------------------------------- flash attention core
def _flash_kernel(q_ref, k_ref, v_ref, bias_ref, o_ref, lse_ref, m_sc, l_sc, acc_sc, *, tk):
    ki = pl.program_id(2)

    @pl.when(ki == 0)
    def _():
        m_sc[...] = jnp.full_like(m_sc, -3.0e38)
        l_sc[...] = jnp.zeros_like(l_sc)
        acc_sc[...] = jnp.zeros_like(acc_sc)

    # scores (tq, tk): Q already carries the 1/sqrt(E) scale (folded into w_q at prep time).
    s = lax.dot_general(q_ref[...], k_ref[...], (((1,), (1,)), ((), ())),
                        preferred_element_type=jnp.float32)
    start = pl.multiple_of(ki * tk, tk)
    bias_tile = bias_ref[:, pl.ds(start, tk)]          # (1, tk), batch-resident, no per-step DMA
    s = jnp.where(bias_tile == 0.0, s, bias_tile)      # replace semantics == torch masked_fill

    m_prev = m_sc[...]
    m_new = jnp.maximum(m_prev, jnp.max(s, axis=-1, keepdims=True))
    alpha = jnp.exp(m_prev - m_new)
    p = jnp.exp(s - m_new)                             # f32 softmax bookkeeping
    l_sc[...] = alpha * l_sc[...] + jnp.sum(p, axis=-1, keepdims=True)
    acc_sc[...] = alpha * acc_sc[...] + lax.dot_general(
        p.astype(v_ref.dtype), v_ref[...], (((1,), (0,)), ((), ())),   # bf16 MXU, f32 acc
        preferred_element_type=jnp.float32)
    m_sc[...] = m_new

    @pl.when(ki == pl.num_programs(2) - 1)
    def _():
        inv_l = pl.reciprocal(l_sc[...], approx=True)
        o_ref[...] = (acc_sc[...] * inv_l).astype(o_ref.dtype)
        lse_ref[...] = m_sc[...] + jnp.log(l_sc[...])


def _flash_attention(q, k, v, bias, num_heads, tq, tk):
    bh, sq_p, d = q.shape
    sk_p = k.shape[1]
    grid = (bh, sq_p // tq, sk_p // tk)

    ctx, lse = pl.pallas_call(
        functools.partial(_flash_kernel, tk=tk),
        out_shape=(
            jax.ShapeDtypeStruct((bh, sq_p, d), q.dtype),
            jax.ShapeDtypeStruct((bh, sq_p, 1), jnp.float32),
        ),
        grid_spec=pltpu.PrefetchScalarGridSpec(
            num_scalar_prefetch=0,
            grid=grid,
            in_specs=[
                pl.BlockSpec((None, tq, d), lambda b, qi, ki: (b, qi, 0)),
                pl.BlockSpec((None, tk, d), lambda b, qi, ki: (b, ki, 0)),
                pl.BlockSpec((None, tk, d), lambda b, qi, ki: (b, ki, 0)),
                pl.BlockSpec((None, 1, sk_p), lambda b, qi, ki: (b // num_heads, 0, 0)),
            ],
            out_specs=[
                pl.BlockSpec((None, tq, d), lambda b, qi, ki: (b, qi, 0)),
                pl.BlockSpec((None, tq, 1), lambda b, qi, ki: (b, qi, 0)),
            ],
            scratch_shapes=[
                pltpu.VMEM((tq, 1), jnp.float32),    # running max m
                pltpu.VMEM((tq, 1), jnp.float32),    # running denom l
                pltpu.VMEM((tq, d), jnp.float32),    # output accumulator
            ],
        ),
        compiler_params=pltpu.CompilerParams(
            dimension_semantics=("parallel", "parallel", "arbitrary"),
            vmem_limit_bytes=_VMEM_LIMIT,
        ),
    )(q, k, v, bias)
    return ctx, lse


# ----------------------------------------------------------------------------- attention-weight matrix
def _attn_weights_kernel(q_ref, k_ref, bias_ref, lse_ref, attn_ref, *, tk):
    ki = pl.program_id(2)
    s = lax.dot_general(q_ref[...], k_ref[...], (((1,), (1,)), ((), ())),
                        preferred_element_type=jnp.float32)
    start = pl.multiple_of(ki * tk, tk)
    bias_tile = bias_ref[:, pl.ds(start, tk)]
    s = jnp.where(bias_tile == 0.0, s, bias_tile)
    attn_ref[...] = jnp.exp(s - lse_ref[...]).astype(attn_ref.dtype)   # exact softmax via flash LSE


def _attention_weights(q, k, bias, lse, num_heads, tq, tk, out_dtype):
    bh, sq_p, d = q.shape
    sk_p = k.shape[1]
    grid = (bh, sq_p // tq, sk_p // tk)

    return pl.pallas_call(
        functools.partial(_attn_weights_kernel, tk=tk),
        out_shape=jax.ShapeDtypeStruct((bh, sq_p, sk_p), out_dtype),
        grid_spec=pltpu.PrefetchScalarGridSpec(
            num_scalar_prefetch=0,
            grid=grid,
            in_specs=[
                pl.BlockSpec((None, tq, d), lambda b, qi, ki: (b, qi, 0)),
                pl.BlockSpec((None, tk, d), lambda b, qi, ki: (b, ki, 0)),
                pl.BlockSpec((None, 1, sk_p), lambda b, qi, ki: (b // num_heads, 0, 0)),
                pl.BlockSpec((None, tq, 1), lambda b, qi, ki: (b, qi, 0)),
            ],
            out_specs=pl.BlockSpec((None, tq, tk), lambda b, qi, ki: (b, qi, ki)),
        ),
        compiler_params=pltpu.CompilerParams(
            dimension_semantics=("parallel", "parallel", "parallel"),
            vmem_limit_bytes=_VMEM_LIMIT,
        ),
    )(q, k, bias, lse)


# ----------------------------------------------------------------------------- parameter preparation
def prepare_params(params, compute_dtype=jnp.bfloat16):
    """Hoist per-call work out of the forward: fold 1/sqrt(E) into w_q, build the fused QKV
    weight once, cast all matmul weights to the MXU compute dtype (bf16)."""
    e = params["w_q"].shape[0]
    scale = 1.0 / float(e) ** 0.5
    w_q = jnp.asarray(params["w_q"], jnp.float32) * scale
    w_k = jnp.asarray(params["w_k"], jnp.float32)
    w_v = jnp.asarray(params["w_v"], jnp.float32)
    return {
        "embed_dim": e,
        "w_q": w_q.astype(compute_dtype),
        "w_k": w_k.astype(compute_dtype),
        "w_v": w_v.astype(compute_dtype),
        "w_qkv": jnp.concatenate([w_q, w_k, w_v], axis=1).astype(compute_dtype),
        "w_o": jnp.asarray(params["w_o"], jnp.float32).astype(compute_dtype),
        "b_o": jnp.asarray(params["b_o"], jnp.float32),
    }


# ----------------------------------------------------------------------------- full module forward
def multi_head_attention(values, keys, queries, mask, params, num_heads,
                         tq=512, tk=256, attn_tq=256, attn_tk=512,
                         compute_dtype=jnp.bfloat16, attn_dtype=jnp.float32):
    if "w_qkv" not in params:          # accept raw params; callers should hoist prepare_params
        params = prepare_params(params, compute_dtype)

    n, sq, e = queries.shape
    sk = keys.shape[1]
    assert values.shape[1] == sk, "value_len must equal key_len"
    d = e // num_heads
    assert d * num_heads == e
    scale = 1.0 / float(e) ** 0.5      # torch divides by sqrt(embed_dim), not sqrt(head_dim)

    x_q = queries.astype(compute_dtype)
    x_k = keys.astype(compute_dtype)
    x_v = values.astype(compute_dtype)

    # ---- projections (fused QKV for self-attention: one wide resident-weight matmul) ----
    if values is keys and keys is queries:
        # NOTE: gated on object identity; equal-but-distinct arrays take the 3-matmul path.
        qkv = _linear(x_q.reshape(n * sq, e), params["w_qkv"], None, compute_dtype)
        q_p, k_p, v_p = jnp.split(qkv, 3, axis=-1)
        q_p, k_p, v_p = (t.reshape(n, sq, e) for t in (q_p, k_p, v_p))
    else:
        q_p = _linear(x_q.reshape(n * sq, e), params["w_q"], None, compute_dtype).reshape(n, sq, e)
        k_p = _linear(x_k.reshape(n * sk, e), params["w_k"], None, compute_dtype).reshape(n, sk, e)
        v_p = _linear(x_v.reshape(n * sk, e), params["w_v"], None, compute_dtype).reshape(n, sk, e)

    # ---- split heads (bf16); pad only the sequence dims, head_dim stays unpadded ----
    qh = _split_heads(q_p, num_heads)          # already pre-scaled by 1/sqrt(E) via w_q
    kh = _split_heads(k_p, num_heads)
    vh = _split_heads(v_p, num_heads)
    sq_p = _round_up(sq, 128)
    sk_p = _round_up(sk, 128)
    tq = _pick_div(sq_p, tq)
    tk = _pick_div(sk_p, tk)
    attn_tq = _pick_div(sq_p, attn_tq)
    attn_tk = _pick_div(sk_p, attn_tk)
    qh = _pad_axis(qh, sq_p, 1)
    kh = _pad_axis(kh, sk_p, 1)
    vh = _pad_axis(vh, sk_p, 1)

    # ---- mask -> replacement bias (0.0 == keep).  Masked real keys get exactly -1e20/sqrt(E)
    #      (matching torch's masked_fill followed by /sqrt(E)); padded keys get a strictly lower
    #      sentinel so they contribute nothing even when an entire row is masked. ----
    if mask is None:
        mask = jnp.ones((n, sk), jnp.float32)
    bias = jnp.where(mask == 0, jnp.float32(_MASKED * scale), jnp.float32(0.0))
    bias = _pad_axis(bias, sk_p, 1, value=_PAD)
    bias = bias.reshape(n, 1, sk_p)

    # ---- flash attention (context + LSE), then exact attention-weight matrix ----
    ctx, lse = _flash_attention(qh, kh, vh, bias, num_heads, tq, tk)
    attn = _attention_weights(qh, kh, bias, lse, num_heads, attn_tq, attn_tk, attn_dtype)
    attn = attn.reshape(n, num_heads, sq_p, sk_p)
    if sq_p != sq or sk_p != sk:
        attn = attn[:, :, :sq, :sk]

    if sq_p != sq:
        ctx = ctx[:, :sq]
    ctx = ctx.reshape(n, num_heads, sq, d).transpose(0, 2, 1, 3).reshape(n, sq, e)

    # ---- output projection (f32 result to match the module's output dtype) ----
    out = _linear(ctx.reshape(n * sq, e), params["w_o"], params["b_o"], jnp.float32)
    return out.reshape(n, sq, e), attn


# ----------------------------------------------------------------------------- pure-JAX reference
def _reference(values, keys, queries, mask, params, num_heads):
    n, sq, e = queries.shape
    d = e // num_heads
    v = (values @ params["w_v"]).reshape(n, -1, num_heads, d)
    k = (keys @ params["w_k"]).reshape(n, -1, num_heads, d)
    q = (queries @ params["w_q"]).reshape(n, sq, num_heads, d)
    energy = jnp.einsum("nqhd,nkhd->nhqk", q, k)
    if mask is not None:
        energy = jnp.where(mask[:, None, None, :] == 0, jnp.float32(-1e20), energy)
    attn = jax.nn.softmax(energy / (e ** 0.5), axis=3)
    out = jnp.einsum("nhqk,nkhd->nqhd", attn, v).reshape(n, sq, e)
    out = out @ params["w_o"] + params["b_o"]
    return out, attn


# ----------------------------------------------------------------------------- demo
if __name__ == "__main__":
    key = jax.random.PRNGKey(0)
    N, S, E, H = 2, 128, 256, 4
    k1, k2, k3, k4, k5, k6 = jax.random.split(key, 6)
    x = jax.random.normal(k1, (N, S, E), dtype=jnp.float32)
    params = {
        "w_q": jax.random.normal(k2, (E, E), jnp.float32) / jnp.sqrt(E),
        "w_k": jax.random.normal(k3, (E, E), jnp.float32) / jnp.sqrt(E),
        "w_v": jax.random.normal(k4, (E, E), jnp.float32) / jnp.sqrt(E),
        "w_o": jax.random.normal(k5, (E, E), jnp.float32) / jnp.sqrt(E),
        "b_o": jax.random.normal(k6, (E,), jnp.float32) * 0.1,
    }
    # mask: batch 0 keeps all keys, batch 1 masks out the last quarter of the keys.
    mask = jnp.ones((N, S), jnp.float32).at[1, 3 * S // 4:].set(0.0)

    prepped = prepare_params(params)     # hoisted once: fused-QKV concat + bf16 casts + Q scale
    out, attn = multi_head_attention(x, x, x, mask, prepped, H)
    out, attn = jax.block_until_ready((out, attn))

    ref_out, ref_attn = _reference(x, x, x, mask, params, H)
    assert out.shape == (N, S, E) and attn.shape == (N, H, S, S)
    assert bool(jnp.allclose(out, ref_out, atol=4e-2, rtol=4e-2)), "output mismatch"
    assert bool(jnp.allclose(attn.astype(jnp.float32), ref_attn, atol=4e-2, rtol=4e-2)), "attention mismatch"
    print("KERNEL_OK")
</pallas_src>

<mosaic_0001>
module attributes {stable_mosaic.version = 11 : i64} {
  func.func @_linear_kernel(%arg0: i32, %arg1: i32, %arg2: memref<256x256xbf16, #tpu.memory_space<vmem>>, %arg3: memref<256x768xbf16, #tpu.memory_space<vmem>>, %arg4: memref<1x768xf32, #tpu.memory_space<vmem>>, %arg5: memref<256x768xbf16, #tpu.memory_space<vmem>>) attributes {dimension_semantics = [#tpu.dimension_semantics<parallel>, #tpu.dimension_semantics<parallel>], iteration_bounds = array<i64: 1, 1>, scalar_prefetch = 0 : i64, scratch_operands = 0 : i64, tpu.core_type = #tpu.core_type<tc>, window_params = [{transform_indices = @transform_0, window_bounds = array<i64: 256, 256>}, {transform_indices = @transform_1, window_bounds = array<i64: 256, 768>}, {transform_indices = @transform_2, window_bounds = array<i64: 1, 768>}, {transform_indices = @transform_3, window_bounds = array<i64: 256, 768>}]} {
    %c0 = arith.constant 0 : index
    %c0_0 = arith.constant 0 : index
    %0 = vector.load %arg2[%c0, %c0_0] : memref<256x256xbf16, #tpu.memory_space<vmem>>, vector<256x256xbf16>
    %c0_1 = arith.constant 0 : index
    %c0_2 = arith.constant 0 : index
    %1 = vector.load %arg3[%c0_1, %c0_2] : memref<256x768xbf16, #tpu.memory_space<vmem>>, vector<256x768xbf16>
    %cst = arith.constant dense<0.000000e+00> : vector<256x768xf32>
    %2 = tpu.matmul %0, %1, %cst {dimension_numbers = #tpu.dot_dimension_numbers<[1], [0], [0], [1], [0, 0, 1, 1], [], []>} : vector<256x256xbf16>, vector<256x768xbf16>, vector<256x768xf32> -> vector<256x768xf32>
    %c0_3 = arith.constant 0 : index
    %c0_4 = arith.constant 0 : index
    %3 = vector.load %arg4[%c0_3, %c0_4] : memref<1x768xf32, #tpu.memory_space<vmem>>, vector<1x768xf32>
    %4 = vector.broadcast %3 : vector<1x768xf32> to vector<256x768xf32>
    %5 = arith.addf %2, %4 : vector<256x768xf32>
    %6 = arith.truncf %5 : vector<256x768xf32> to vector<256x768xbf16>
    %c0_5 = arith.constant 0 : index
    %c0_6 = arith.constant 0 : index
    %7 = vector.load %arg5[%c0_5, %c0_6] : memref<256x768xbf16, #tpu.memory_space<vmem>>, vector<256x768xbf16>
    tpu.vector_store %arg5[%c0_5, %c0_6], %6 {strides = array<i32>} : memref<256x768xbf16, #tpu.memory_space<vmem>>, vector<256x768xbf16>,
    return
  }
  func.func @transform_0(%arg0: i32, %arg1: i32) -> (i32, i32) {
    %c0_i32 = arith.constant 0 : i32
    %c0_i32_0 = arith.constant 0 : i32
    return %arg0, %c0_i32 : i32, i32
  }
  func.func @transform_1(%arg0: i32, %arg1: i32) -> (i32, i32) {
    %c0_i32 = arith.constant 0 : i32
    %c0_i32_0 = arith.constant 0 : i32
    return %c0_i32, %arg1 : i32, i32
  }
  func.func @transform_2(%arg0: i32, %arg1: i32) -> (i32, i32) {
    %c0_i32 = arith.constant 0 : i32
    %c0_i32_0 = arith.constant 0 : i32
    return %c0_i32, %arg1 : i32, i32
  }
  func.func @transform_3(%arg0: i32, %arg1: i32) -> (i32, i32) {
    %c0_i32 = arith.constant 0 : i32
    return %arg0, %arg1 : i32, i32
  }
}

</mosaic_0001>

<bundles_post_ra>
// kernel: tpu_custom_call.1
= control target key start
LH: loop header
LB: loop body
LE: loop exit
PB: predicated region body
PF: predicated region fallthrough
CT: control target
= control target key end

     0   :  { %8 = vsyncpa [#allocation3], 0  ;;  %s3161_s0 = inlined_call_operand.hbm [shape: bf16[256,256], index: 0, kind: input, shape index: {}]   ;;  %s3162_s1 = inlined_call_operand.hbm [shape: bf16[256,768], index: 1, kind: input, shape index: {}]   ;;  %s3163_s2 = inlined_call_operand.hbm [shape: f32[1,768], index: 2, kind: input, shape index: {}]   ;;  %s3164_s3 = inlined_call_operand.hbm [shape: bf16[256,768], index: 3, kind: output, shape index: {}]  }
   0x1   :  { %9 = vsyncpa [#allocation6], 0 }
   0x2   :  { %10 = vsyncpa [#allocation4], 0  ;;  %s2761_s12 = smov [#allocation5]  }
   0x3   :  { %s28_s13 = sshll.u32 %s2761_s12, 4  ;;  %s29_s13 = int_to_ptr.vmem [resolvable:$true] %s28_s13 }
   0x4   :  { %s2683_s14 = scalar_lea.vmem %s29_s13, 12288  ;;  %p2688_p1 = scmp.lt.s32.totalorder %s29_s13, %s29_s13 }
   0x5   :  { %p2684_p0 = scmp.ne.s32.totalorder %s29_s13, %s2683_s14  ;;  %p2689_p2 = scmp.lt.s32.totalorder %s2683_s14, %s2683_s14 }
   0x7   :  { %p2690_p3 = por %p2689_p2, %p2688_p1 }
   0x9   :  { %p2691_p4 = pnand %p2690_p3, %p2684_p0 }
   0xb   :  { %2694 = shalt.err (!%p2691_p4)
}
   0xc   :  { %s2762_s15 = smov 384   ;;  %s2763_s16 = smov 24  }
   0xd   :  { %34 = dma.hbm_to_vmem [thread:$0]  %s3162_s1, 12288, %s29_s13, [#allocation6], %s2762_s15, %s2762_s15, %s2763_s16  }
   0xe   :  { %s2764_s19 = smov [#allocation2]  }
   0xf   :  { %s16_s20 = sshll.u32 %s2764_s19, 4  ;;  %s17_s20 = int_to_ptr.vmem [resolvable:$true] %s16_s20 }
  0x10   :  { %s2703_s21 = scalar_lea.vmem %s17_s20, 4096  ;;  %p2708_p6 = scmp.lt.s32.totalorder %s17_s20, %s17_s20 }
  0x11   :  { %p2704_p5 = scmp.ne.s32.totalorder %s17_s20, %s2703_s21  ;;  %p2709_p7 = scmp.lt.s32.totalorder %s2703_s21, %s2703_s21 }
  0x13   :  { %p2710_p8 = por %p2709_p7, %p2708_p6 }
  0x15   :  { %p2711_p9 = pnand %p2710_p8, %p2704_p5 }
  0x17   :  { %2714 = shalt.err (!%p2711_p9)
}
  0x18   :  { %s2765_s22 = smov 128   ;;  %s2766_s23 = smov 8  }
  0x19   :  { %22 = dma.hbm_to_vmem [thread:$0]  %s3161_s0, 4096, %s17_s20, [#allocation3], %s2765_s22, %s2765_s22, %s2766_s23  }
  0x1a   :  { %s2767_s26 = smov [#allocation7]  }
  0x1b   :  { %s41_s27 = sshll.u32 %s2767_s26, 4  ;;  %s42_s27 = int_to_ptr.vmem [resolvable:$true] %s41_s27 }
  0x1c   :  { %s2723_s1 = scalar_lea.vmem %s42_s27, 96  ;;  %p2728_p11 = scmp.lt.s32.totalorder %s42_s27, %s42_s27 }
  0x1d   :  { %p2724_p10 = scmp.ne.s32.totalorder %s42_s27, %s2723_s1  ;;  %p2729_p12 = scmp.lt.s32.totalorder %s2723_s1, %s2723_s1 }
  0x1f   :  { %p2730_p13 = por %p2729_p12, %p2728_p11 }
  0x21   :  { %p2731_p0 = pnand %p2730_p13, %p2724_p10 }
  0x23   :  { %2734 = shalt.err (!%p2731_p0)
}
  0x24   :  { %44 = dma.hbm_to_vmem [thread:$0]  %s3163_s2, 96, %s42_s27, [#allocation6]  }
  0x25   :  { %2755 = dma.done.wait [#allocation3], 4096  }
  0x26   :  { %2756 = vsyncadd [#allocation3], 4294963200 }
  0x27   :  { %2757 = dma.done.wait [#allocation6], 12384  }
  0x28   :  { %2758 = vsyncadd [#allocation6], 4294954912  ;;  %v2483_v0 = vld [vmem:[#allocation5 + $0x154] ss:$24 sps:$4 sm:$0xff]   ;;  %v2485_v1 = vld [vmem:[#allocation5 + $0x150] ss:$24 sps:$4 sm:$0xff]  }
  0x29   :  { %854 = vmatprep.subr.bf16.mxu0 %v2483_v0  ;;  %2443 = vmatprep.subr.bf16.mxu1 %v2483_v0  ;;  %v2486_v2 = vld [vmem:[#allocation5 + $0x124] ss:$24 sps:$4 sm:$0xff]   ;;  %v2488_v3 = vld [vmem:[#allocation5 + $0x120] ss:$24 sps:$4 sm:$0xff]   ;;  %v2489_v4 = vld [vmem:[#allocation5 + $0xf4] ss:$24 sps:$4 sm:$0xff]  }
  0x2a   :  { %855 = vmatpush1.bf16.msra.mxu0 %v2485_v1  ;;  %2459 = vmatpush1.bf16.msra.mxu1 %v2485_v1  ;;  %v2491_v5 = vld [vmem:[#allocation5 + $0xf0] ss:$24 sps:$4 sm:$0xff]   ;;  %v2492_v6 = vld [vmem:[#allocation5 + $0xc4] ss:$24 sps:$4 sm:$0xff]   ;;  %v2494_v7 = vld [vmem:[#allocation5 + $0xc0] ss:$24 sps:$4 sm:$0xff]  }
  0x2b   :  { %856 = vmatprep.subr.bf16.mxu0 %v2486_v2  ;;  %2444 = vmatprep.subr.bf16.mxu1 %v2486_v2  ;;  %v2495_v8 = vld [vmem:[#allocation5 + $0x94] ss:$24 sps:$4 sm:$0xff]   ;;  %v2497_v9 = vld [vmem:[#allocation5 + $0x90] ss:$24 sps:$4 sm:$0xff]   ;;  %v2498_v10 = vld [vmem:[#allocation5 + $0x64] ss:$24 sps:$4 sm:$0xff]  }
  0x2c   :  { %v2500_v11 = vld [vmem:[#allocation5 + $0x60] ss:$24 sps:$4 sm:$0xff]   ;;  %v2501_v12 = vld [vmem:[#allocation5 + $0x34] ss:$24 sps:$4 sm:$0xff]   ;;  %v2503_v14 = vld [vmem:[#allocation5 + $0x30] ss:$24 sps:$4 sm:$0xff]  }
  0x2d   :  { %v2801_v13 = vld [vmem:[#allocation2 + $0x4] ss:$8 sps:$4 sm:$0xff]   ;;  %v2506_v17 = vld [vmem:[#allocation5] ss:$24 sps:$4 sm:$0xff]   ;;  %v2509_v19 = vld [vmem:[#allocation5 + $0x2d0] ss:$24 sps:$4 sm:$0xff]  }
  0x2e   :  { %857 = vmatpush1.bf16.msra.mxu0 %v2488_v3  ;;  %2460 = vmatpush1.bf16.msra.mxu1 %v2488_v3  ;;  %v2803_v15 = vld [vmem:[#allocation2 + $0x84] ss:$8 sps:$4 sm:$0xff]   ;;  %v2512_v21 = vld [vmem:[#allocation5 + $0x2a0] ss:$24 sps:$4 sm:$0xff]   ;;  %v2515_v23 = vld [vmem:[#allocation5 + $0x270] ss:$24 sps:$4 sm:$0xff]  }
  0x2f   :  { %858 = vmatprep.subr.bf16.mxu0 %v2489_v4  ;;  %2445 = vmatprep.subr.bf16.mxu1 %v2489_v4  ;;  %v2504_v16 = vld [vmem:[#allocation5 + $0x4] ss:$24 sps:$4 sm:$0xff]   ;;  %v2507_v18 = vld [vmem:[#allocation5 + $0x2d4] ss:$24 sps:$4 sm:$0xff]   ;;  %v2518_v25 = vld [vmem:[#allocation5 + $0x240] ss:$24 sps:$4 sm:$0xff]  }
  0x30   :  { %886 = vmatprep.mubr.bf16.mxu0 %v2801_v13  ;;  %966 = vmatprep.mubr.bf16.mxu1 %v2803_v15  ;;  %v2510_v20 = vld [vmem:[#allocation5 + $0x2a4] ss:$24 sps:$4 sm:$0xff]   ;;  %v2513_v22 = vld [vmem:[#allocation5 + $0x274] ss:$24 sps:$4 sm:$0xff]   ;;  %v2521_v27 = vld [vmem:[#allocation5 + $0x210] ss:$24 sps:$4 sm:$0xff]  }
  0x31   :  { %v2516_v24 = vld [vmem:[#allocation5 + $0x244] ss:$24 sps:$4 sm:$0xff]   ;;  %v2519_v26 = vld [vmem:[#allocation5 + $0x214] ss:$24 sps:$4 sm:$0xff]   ;;  %v2524_v29 = vld [vmem:[#allocation5 + $0x1e0] ss:$24 sps:$4 sm:$0xff]  }
  0x32   :  { %859 = vmatpush1.bf16.msra.mxu0 %v2491_v5  ;;  %2461 = vmatpush1.bf16.msra.mxu1 %v2491_v5  ;;  %v2522_v28 = vld [vmem:[#allocation5 + $0x1e4] ss:$24 sps:$4 sm:$0xff]   ;;  %v2525_v30 = vld [vmem:[#allocation5 + $0x1b4] ss:$24 sps:$4 sm:$0xff]   ;;  %v2527_v31 = vld [vmem:[#allocation5 + $0x1b0] ss:$24 sps:$4 sm:$0xff]  }
  0x33   :  { %860 = vmatprep.subr.bf16.mxu0 %v2492_v6  ;;  %2446 = vmatprep.subr.bf16.mxu1 %v2492_v6  ;;  %v2528_v32 = vld [vmem:[#allocation5 + $0x184] ss:$24 sps:$4 sm:$0xff]   ;;  %v2530_v33 = vld [vmem:[#allocation5 + $0x180] ss:$24 sps:$4 sm:$0xff]   ;;  %v2548_v41 = vld [vmem:[#allocation5 + $0x134] ss:$24 sps:$4 sm:$0xff]  }
  0x34   :  { %v2539_v34 = vld [vmem:[#allocation5 + $0x15c] ss:$24 sps:$4 sm:$0xff]   ;;  %v2807_v35 = vld [vmem:[#allocation2] ss:$8 sps:$4 sm:$0xff]   ;;  %v2537_v38 = vld [vmem:[#allocation5 + $0x158] ss:$24 sps:$4 sm:$0xff]  }
  0x35   :  { %v2542_v36 = vld [vmem:[#allocation5 + $0x164] ss:$24 sps:$4 sm:$0xff]   ;;  %v2809_v37 = vld [vmem:[#allocation2 + $0x80] ss:$8 sps:$4 sm:$0xff]   ;;  %v2817_v47 = vld [vmem:[#allocation2 + $0x10] ss:$8 sps:$4 sm:$0xff]  }
  0x36   :  { %861 = vmatpush1.bf16.msra.mxu0 %v2494_v7  ;;  %2462 = vmatpush1.bf16.msra.mxu1 %v2494_v7  ;;  %v2540_v39 = vld [vmem:[#allocation5 + $0x160] ss:$24 sps:$4 sm:$0xff]   ;;  %v2545_v40 = vld [vmem:[#allocation5 + $0x12c] ss:$24 sps:$4 sm:$0xff]   ;;  %v2811_v42 = vld [vmem:[#allocation2 + $0x14] ss:$8 sps:$4 sm:$0xff]  }
  0x37   :  { %862 = vmatprep.subr.bf16.mxu0 %v2495_v8  ;;  %2447 = vmatprep.subr.bf16.mxu1 %v2495_v8  ;;  %v2813_v43 = vld [vmem:[#allocation2 + $0x94] ss:$8 sps:$4 sm:$0xff]   ;;  %v2543_v44 = vld [vmem:[#allocation5 + $0x128] ss:$24 sps:$4 sm:$0xff]   ;;  %v2821_v49 = vld [vmem:[#allocation2 + $0x90] ss:$8 sps:$4 sm:$0xff]  }
  0x38   :  { %v2546_v45 = vld [vmem:[#allocation5 + $0x130] ss:$24 sps:$4 sm:$0xff]   ;;  %v2557_v46 = vld [vmem:[#allocation5 + $0xfc] ss:$24 sps:$4 sm:$0xff]   ;;  %v2558_v51 = vld [vmem:[#allocation5 + $0x100] ss:$24 sps:$4 sm:$0xff]  }
  0x39   :  { %v2560_v48 = vld [vmem:[#allocation5 + $0x104] ss:$24 sps:$4 sm:$0xff]   ;;  %v2555_v50 = vld [vmem:[#allocation5 + $0xf8] ss:$24 sps:$4 sm:$0xff]   ;;  %v2566_v53 = vld [vmem:[#allocation5 + $0xd4] ss:$24 sps:$4 sm:$0xff]  }
  0x3a   :  { %863 = vmatpush1.bf16.msra.mxu0 %v2497_v9  ;;  %2463 = vmatpush1.bf16.msra.mxu1 %v2497_v9  ;;  %v2563_v52 = vld [vmem:[#allocation5 + $0xcc] ss:$24 sps:$4 sm:$0xff]   ;;  %v2561_v56 = vld [vmem:[#allocation5 + $0xc8] ss:$24 sps:$4 sm:$0xff]   ;;  %v2575_v58 = vld [vmem:[#allocation5 + $0x9c] ss:$24 sps:$4 sm:$0xff]  }
  0x3b   :  { %864 = vmatprep.subr.bf16.mxu0 %v2498_v10  ;;  %2448 = vmatprep.subr.bf16.mxu1 %v2498_v10  ;;  %v2823_v54 = vld [vmem:[#allocation2 + $0x24] ss:$8 sps:$4 sm:$0xff]   ;;  %v2564_v57 = vld [vmem:[#allocation5 + $0xd0] ss:$24 sps:$4 sm:$0xff]   ;;  %v2576_v63 = vld [vmem:[#allocation5 + $0xa0] ss:$24 sps:$4 sm:$0xff]  }
  0x3c   :  { %v2825_v55 = vld [vmem:[#allocation2 + $0xa4] ss:$8 sps:$4 sm:$0xff]   ;;  %v2829_v59 = vld [vmem:[#allocation2 + $0x20] ss:$8 sps:$4 sm:$0xff]   ;;  %v2573_v62 = vld [vmem:[#allocation5 + $0x98] ss:$24 sps:$4 sm:$0xff]  }
  0x3d   :  { %v2578_v60 = vld [vmem:[#allocation5 + $0xa4] ss:$24 sps:$4 sm:$0xff]   ;;  %v2833_v61 = vld [vmem:[#allocation2 + $0xa0] ss:$8 sps:$4 sm:$0xff]   ;;  %v2584_v1 = vld [vmem:[#allocation5 + $0x74] ss:$24 sps:$4 sm:$0xff]  }
  0x3e   :  { %865 = vmatpush1.bf16.msra.mxu0 %v2500_v11  ;;  %2464 = vmatpush1.bf16.msra.mxu1 %v2500_v11  ;;  %v2581_v0 = vld [vmem:[#allocation5 + $0x6c] ss:$24 sps:$4 sm:$0xff]   ;;  %v2835_v2 = vld [vmem:[#allocation2 + $0x34] ss:$8 sps:$4 sm:$0xff]   ;;  %v2579_v4 = vld [vmem:[#allocation5 + $0x68] ss:$24 sps:$4 sm:$0xff]  }
  0x3f   :  { %866 = vmatprep.subr.bf16.mxu0 %v2501_v12  ;;  %2449 = vmatprep.subr.bf16.mxu1 %v2501_v12  ;;  %v2837_v3 = vld [vmem:[#allocation2 + $0xb4] ss:$8 sps:$4 sm:$0xff]   ;;  %v2582_v5 = vld [vmem:[#allocation5 + $0x70] ss:$24 sps:$4 sm:$0xff]   ;;  %v2594_v11 = vld [vmem:[#allocation5 + $0x40] ss:$24 sps:$4 sm:$0xff]  }
  0x40   :  { %v2593_v6 = vld [vmem:[#allocation5 + $0x3c] ss:$24 sps:$4 sm:$0xff]   ;;  %v2843_v8 = vld [vmem:[#allocation2 + $0x30] ss:$8 sps:$4 sm:$0xff]   ;;  %v2599_v12 = vld [vmem:[#allocation5 + $0xc] ss:$24 sps:$4 sm:$0xff]  }
  0x41   :  { %v2596_v7 = vld [vmem:[#allocation5 + $0x44] ss:$24 sps:$4 sm:$0xff]   ;;  %v2845_v9 = vld [vmem:[#allocation2 + $0xb0] ss:$8 sps:$4 sm:$0xff]   ;;  %s2768_s0 = smov [#allocation8]  }
  0x42   :  { %867 = vmatpush1.bf16.msra.mxu0 %v2503_v14  ;;  %2465 = vmatpush1.bf16.msra.mxu1 %v2503_v14  ;;  %v2591_v10 = vld [vmem:[#allocation5 + $0x38] ss:$24 sps:$4 sm:$0xff]   ;;  %v2602_v14 = vld [vmem:[#allocation5 + $0x14] ss:$24 sps:$4 sm:$0xff]   ;;  %s2110_s2 = sshll.u32 %s2768_s0, 4  ;;  %s2111_s2 = int_to_ptr.vmem [resolvable:$true] %s2110_s2 }
  0x43   :  { %868 = vmatprep.subr.bf16.mxu0 %v2504_v16  ;;  %2450 = vmatprep.subr.bf16.mxu1 %v2504_v16  ;;  %v2847_v16 = vld [vmem:[#allocation2 + $0x44] ss:$8 sps:$4 sm:$0xff]   ;;  %s2735_s30 = scalar_lea.vmem %s2111_s2, 12288  ;;  %p2740_p2 = scmp.lt.s32.totalorder %s2111_s2, %s2111_s2 }
  0x44   :  { %p2736_p1 = scmp.ne.s32.totalorder %s2111_s2, %s2735_s30  ;;  %p2741_p3 = scmp.lt.s32.totalorder %s2735_s30, %s2735_s30 }
  0x46   :  { %869 = vmatpush1.bf16.msra.mxu0 %v2506_v17  ;;  %2466 = vmatpush1.bf16.msra.mxu1 %v2506_v17  ;;  %v2849_v17 = vld [vmem:[#allocation2 + $0xc4] ss:$8 sps:$4 sm:$0xff]   ;;  %p2742_p4 = por %p2741_p3, %p2740_p2 }
  0x47   :  { %870 = vmatprep.subr.bf16.mxu0 %v2507_v18  ;;  %2451 = vmatprep.subr.bf16.mxu1 %v2507_v18  ;;  %v2597_v18 = vld [vmem:[#allocation5 + $0x8] ss:$24 sps:$4 sm:$0xff]  }
  0x48   :  { %p2743_p5 = pnand %p2742_p4, %p2736_p1 }
  0x4a   :  { %871 = vmatpush2.bf16.msra.mxu0 %v2509_v19  ;;  %2467 = vmatpush2.bf16.msra.mxu1 %v2509_v19  ;;  %v2600_v19 = vld [vmem:[#allocation5 + $0x10] ss:$24 sps:$4 sm:$0xff]  }
  0x4b   :  { %872 = vmatprep.subr.bf16.mxu0 %v2510_v20  ;;  %2452 = vmatprep.subr.bf16.mxu1 %v2510_v20  ;;  %v2611_v20 = vld [vmem:[#allocation5 + $0x2dc] ss:$24 sps:$4 sm:$0xff]  }
  0x4e   :  { %873 = vmatpush2.bf16.msra.mxu0 %v2512_v21  ;;  %2468 = vmatpush2.bf16.msra.mxu1 %v2512_v21  ;;  %v2614_v21 = vld [vmem:[#allocation5 + $0x2e4] ss:$24 sps:$4 sm:$0xff]  }
  0x4f   :  { %874 = vmatprep.subr.bf16.mxu0 %v2513_v22  ;;  %2453 = vmatprep.subr.bf16.mxu1 %v2513_v22  ;;  %v2855_v22 = vld [vmem:[#allocation2 + $0x40] ss:$8 sps:$4 sm:$0xff]  }
  0x52   :  { %875 = vmatpush2.bf16.msra.mxu0 %v2515_v23  ;;  %2469 = vmatpush2.bf16.msra.mxu1 %v2515_v23  ;;  %v2857_v23 = vld [vmem:[#allocation2 + $0xc0] ss:$8 sps:$4 sm:$0xff]  }
  0x53   :  { %876 = vmatprep.subr.bf16.mxu0 %v2516_v24  ;;  %2454 = vmatprep.subr.bf16.mxu1 %v2516_v24  ;;  %v2609_v24 = vld [vmem:[#allocation5 + $0x2d8] ss:$24 sps:$4 sm:$0xff]  }
  0x56   :  { %877 = vmatpush2.bf16.msra.mxu0 %v2518_v25  ;;  %2470 = vmatpush2.bf16.msra.mxu1 %v2518_v25  ;;  %v2612_v25 = vld [vmem:[#allocation5 + $0x2e0] ss:$24 sps:$4 sm:$0xff]  }
  0x57   :  { %878 = vmatprep.subr.bf16.mxu0 %v2519_v26  ;;  %2455 = vmatprep.subr.bf16.mxu1 %v2519_v26  ;;  %v2617_v26 = vld [vmem:[#allocation5 + $0x2ac] ss:$24 sps:$4 sm:$0xff]  }
  0x5a   :  { %879 = vmatpush2.bf16.msra.mxu0 %v2521_v27  ;;  %2471 = vmatpush2.bf16.msra.mxu1 %v2521_v27  ;;  %v2620_v27 = vld [vmem:[#allocation5 + $0x2b4] ss:$24 sps:$4 sm:$0xff]  }
  0x5b   :  { %880 = vmatprep.subr.bf16.mxu0 %v2522_v28  ;;  %2456 = vmatprep.subr.bf16.mxu1 %v2522_v28  ;;  %v2859_v28 = vld [vmem:[#allocation2 + $0x54] ss:$8 sps:$4 sm:$0xff]  }
  0x5e   :  { %881 = vmatpush2.bf16.msra.mxu0 %v2524_v29  ;;  %2472 = vmatpush2.bf16.msra.mxu1 %v2524_v29  ;;  %v2861_v29 = vld [vmem:[#allocation2 + $0xd4] ss:$8 sps:$4 sm:$0xff]  }
  0x5f   :  { %882 = vmatprep.subr.bf16.mxu0 %v2525_v30  ;;  %2457 = vmatprep.subr.bf16.mxu1 %v2525_v30  ;;  %v2615_v30 = vld [vmem:[#allocation5 + $0x2a8] ss:$24 sps:$4 sm:$0xff]  }
  0x62   :  { %883 = vmatpush2.bf16.msra.mxu0 %v2527_v31  ;;  %2473 = vmatpush2.bf16.msra.mxu1 %v2527_v31  ;;  %v2618_v31 = vld [vmem:[#allocation5 + $0x2b0] ss:$24 sps:$4 sm:$0xff]  }
  0x63   :  { %884 = vmatprep.subr.bf16.mxu0 %v2528_v32  ;;  %2458 = vmatprep.subr.bf16.mxu1 %v2528_v32  ;;  %v2629_v32 = vld [vmem:[#allocation5 + $0x27c] ss:$24 sps:$4 sm:$0xff]  }
  0x66   :  { %885 = vmatpush2.bf16.msra.mxu0 %v2530_v33  ;;  %2474 = vmatpush2.bf16.msra.mxu1 %v2530_v33  ;;  %v2632_v33 = vld [vmem:[#allocation5 + $0x284] ss:$24 sps:$4 sm:$0xff]  }
  0x67   :  { %1047 = vmatprep.subr.bf16.mxu1 %v2539_v34  ;;  %1240 = vmatprep.subr.bf16.mxu0 %v2542_v36  ;;  %v2867_v34 = vld [vmem:[#allocation2 + $0x50] ss:$8 sps:$4 sm:$0xff]  }
  0x68   :  { %v2869_v36 = vld [vmem:[#allocation2 + $0xd0] ss:$8 sps:$4 sm:$0xff]  }
  0x69   :  { %887 = vmatmul.mubr.bf16.vlgmr.msra.gmra.mxu0 %v2807_v35  ;;  %967 = vmatmul.mubr.bf16.vlgmr.msra.gmra.mxu1 %v2809_v37 }
  0x6a   :  { %1048 = vmatpush1.bf16.msra.mxu1 %v2537_v38  ;;  %1241 = vmatpush1.bf16.msra.mxu0 %v2540_v39  ;;  %v2627_v38 = vld [vmem:[#allocation5 + $0x278] ss:$24 sps:$4 sm:$0xff]  }
  0x6b   :  { %1049 = vmatprep.subr.bf16.mxu1 %v2545_v40  ;;  %1242 = vmatprep.subr.bf16.mxu0 %v2548_v41  ;;  %v2630_v39 = vld [vmem:[#allocation5 + $0x280] ss:$24 sps:$4 sm:$0xff]   ;;  %v2635_v40 = vld [vmem:[#allocation5 + $0x24c] ss:$24 sps:$4 sm:$0xff]  }
  0x6c   :  { %896 = vmatprep.mubr.bf16.mxu0 %v2811_v42  ;;  %976 = vmatprep.mubr.bf16.mxu1 %v2813_v43  ;;  %v2638_v41 = vld [vmem:[#allocation5 + $0x254] ss:$24 sps:$4 sm:$0xff]  }
  0x6e   :  { %1050 = vmatpush1.bf16.msra.mxu1 %v2543_v44  ;;  %1243 = vmatpush1.bf16.msra.mxu0 %v2546_v45  ;;  %v2871_v44 = vld [vmem:[#allocation2 + $0x64] ss:$8 sps:$4 sm:$0xff]  }
  0x6f   :  { %1051 = vmatprep.subr.bf16.mxu1 %v2557_v46  ;;  %1244 = vmatprep.subr.bf16.mxu0 %v2560_v48  ;;  %v2873_v45 = vld [vmem:[#allocation2 + $0xe4] ss:$8 sps:$4 sm:$0xff]   ;;  %v2633_v46 = vld [vmem:[#allocation5 + $0x248] ss:$24 sps:$4 sm:$0xff]  }
  0x70   :  { %v2636_v48 = vld [vmem:[#allocation5 + $0x250] ss:$24 sps:$4 sm:$0xff]  }
  0x71   :  { %897 = vmatmul.mubr.bf16.gmra.mxu0 %v2817_v47  ;;  %977 = vmatmul.mubr.bf16.gmra.mxu1 %v2821_v49 }
  0x72   :  { %1052 = vmatpush1.bf16.msra.mxu1 %v2555_v50  ;;  %1245 = vmatpush1.bf16.msra.mxu0 %v2558_v51  ;;  %v2647_v50 = vld [vmem:[#allocation5 + $0x21c] ss:$24 sps:$4 sm:$0xff]  }
  0x73   :  { %1053 = vmatprep.subr.bf16.mxu1 %v2563_v52  ;;  %1246 = vmatprep.subr.bf16.mxu0 %v2566_v53  ;;  %v2650_v51 = vld [vmem:[#allocation5 + $0x224] ss:$24 sps:$4 sm:$0xff]   ;;  %v2879_v52 = vld [vmem:[#allocation2 + $0x60] ss:$8 sps:$4 sm:$0xff]  }
  0x74   :  { %906 = vmatprep.mubr.bf16.mxu0 %v2823_v54  ;;  %986 = vmatprep.mubr.bf16.mxu1 %v2825_v55  ;;  %v2881_v53 = vld [vmem:[#allocation2 + $0xe0] ss:$8 sps:$4 sm:$0xff]  }
  0x76   :  { %1054 = vmatpush1.bf16.msra.mxu1 %v2561_v56  ;;  %1247 = vmatpush1.bf16.msra.mxu0 %v2564_v57  ;;  %v2645_v56 = vld [vmem:[#allocation5 + $0x218] ss:$24 sps:$4 sm:$0xff]  }
  0x77   :  { %1055 = vmatprep.subr.bf16.mxu1 %v2575_v58  ;;  %1248 = vmatprep.subr.bf16.mxu0 %v2578_v60  ;;  %v2648_v57 = vld [vmem:[#allocation5 + $0x220] ss:$24 sps:$4 sm:$0xff]   ;;  %v2653_v58 = vld [vmem:[#allocation5 + $0x1ec] ss:$24 sps:$4 sm:$0xff]  }
  0x78   :  { %v2656_v60 = vld [vmem:[#allocation5 + $0x1f4] ss:$24 sps:$4 sm:$0xff]  }
  0x79   :  { %907 = vmatmul.mubr.bf16.gmra.mxu0 %v2829_v59  ;;  %987 = vmatmul.mubr.bf16.gmra.mxu1 %v2833_v61 }
  0x7a   :  { %1056 = vmatpush1.bf16.msra.mxu1 %v2573_v62  ;;  %1249 = vmatpush1.bf16.msra.mxu0 %v2576_v63  ;;  %v2657_v62 = vld [vmem:[#allocation2 + $0x74] ss:$8 sps:$4 sm:$0xff]  }
  0x7b   :  { %1057 = vmatprep.subr.bf16.mxu1 %v2581_v0  ;;  %1250 = vmatprep.subr.bf16.mxu0 %v2584_v1  ;;  %v2883_v63 = vld [vmem:[#allocation2 + $0xf4] ss:$8 sps:$4 sm:$0xff]   ;;  %v2651_v0 = vld [vmem:[#allocation5 + $0x1e8] ss:$24 sps:$4 sm:$0xff]  }
  0x7c   :  { %916 = vmatprep.mubr.bf16.mxu0 %v2835_v2  ;;  %996 = vmatprep.mubr.bf16.mxu1 %v2837_v3  ;;  %v2654_v1 = vld [vmem:[#allocation5 + $0x1f0] ss:$24 sps:$4 sm:$0xff]  }
  0x7e   :  { %1058 = vmatpush1.bf16.msra.mxu1 %v2579_v4  ;;  %1251 = vmatpush1.bf16.msra.mxu0 %v2582_v5  ;;  %v2665_v4 = vld [vmem:[#allocation5 + $0x1bc] ss:$24 sps:$4 sm:$0xff]  }
  0x7f   :  { %1059 = vmatprep.subr.bf16.mxu1 %v2593_v6  ;;  %1252 = vmatprep.subr.bf16.mxu0 %v2596_v7  ;;  %v2668_v5 = vld [vmem:[#allocation5 + $0x1c4] ss:$24 sps:$4 sm:$0xff]   ;;  %v2661_v6 = vld [vmem:[#allocation2 + $0x70] ss:$8 sps:$4 sm:$0xff]  }
  0x80   :  { %v2888_v7 = vld [vmem:[#allocation2 + $0xf0] ss:$8 sps:$4 sm:$0xff]  }
  0x81   :  { %917 = vmatmul.mubr.bf16.gmra.mxu0 %v2843_v8  ;;  %997 = vmatmul.mubr.bf16.gmra.mxu1 %v2845_v9 }
  0x82   :  { %1060 = vmatpush1.bf16.msra.mxu1 %v2591_v10  ;;  %1253 = vmatpush1.bf16.msra.mxu0 %v2594_v11  ;;  %v2663_v10 = vld [vmem:[#allocation5 + $0x1b8] ss:$24 sps:$4 sm:$0xff]  }
  0x83   :  { %1061 = vmatprep.subr.bf16.mxu1 %v2599_v12  ;;  %1254 = vmatprep.subr.bf16.mxu0 %v2602_v14  ;;  %v2666_v11 = vld [vmem:[#allocation5 + $0x1c0] ss:$24 sps:$4 sm:$0xff]   ;;  %v2671_v12 = vld [vmem:[#allocation5 + $0x18c] ss:$24 sps:$4 sm:$0xff]  }
  0x84   :  { %926 = vmatprep.mubr.bf16.mxu0 %v2847_v16  ;;  %1006 = vmatprep.mubr.bf16.mxu1 %v2849_v17  ;;  %v2674_v14 = vld [vmem:[#allocation5 + $0x194] ss:$24 sps:$4 sm:$0xff]  }
  0x86   :  { %1062 = vmatpush1.bf16.msra.mxu1 %v2597_v18  ;;  %1255 = vmatpush1.bf16.msra.mxu0 %v2600_v19  ;;  %v2669_v18 = vld [vmem:[#allocation5 + $0x188] ss:$24 sps:$4 sm:$0xff]  }
  0x87   :  { %1063 = vmatprep.subr.bf16.mxu1 %v2611_v20  ;;  %1256 = vmatprep.subr.bf16.mxu0 %v2614_v21  ;;  %v2672_v19 = vld [vmem:[#allocation5 + $0x190] ss:$24 sps:$4 sm:$0xff]  }
  0x89   :  { %927 = vmatmul.mubr.bf16.gmra.mxu0 %v2855_v22  ;;  %1007 = vmatmul.mubr.bf16.gmra.mxu1 %v2857_v23 }
  0x8a   :  { %1064 = vmatpush2.bf16.msra.mxu1 %v2609_v24  ;;  %1257 = vmatpush2.bf16.msra.mxu0 %v2612_v25 }
  0x8b   :  { %1065 = vmatprep.subr.bf16.mxu1 %v2617_v26  ;;  %1258 = vmatprep.subr.bf16.mxu0 %v2620_v27 }
  0x8c   :  { %936 = vmatprep.mubr.bf16.mxu0 %v2859_v28  ;;  %1016 = vmatprep.mubr.bf16.mxu1 %v2861_v29 }
  0x8e   :  { %1066 = vmatpush2.bf16.msra.mxu1 %v2615_v30  ;;  %1259 = vmatpush2.bf16.msra.mxu0 %v2618_v31 }
  0x8f   :  { %1067 = vmatprep.subr.bf16.mxu1 %v2629_v32  ;;  %1260 = vmatprep.subr.bf16.mxu0 %v2632_v33 }
  0x91   :  { %937 = vmatmul.mubr.bf16.gmra.mxu0 %v2867_v34  ;;  %1017 = vmatmul.mubr.bf16.gmra.mxu1 %v2869_v36 }
  0x92   :  { %1068 = vmatpush2.bf16.msra.mxu1 %v2627_v38  ;;  %1261 = vmatpush2.bf16.msra.mxu0 %v2630_v39 }
  0x93   :  { %1069 = vmatprep.subr.bf16.mxu1 %v2635_v40  ;;  %1262 = vmatprep.subr.bf16.mxu0 %v2638_v41 }
  0x94   :  { %946 = vmatprep.mubr.bf16.mxu0 %v2871_v44  ;;  %1026 = vmatprep.mubr.bf16.mxu1 %v2873_v45 }
  0x96   :  { %1070 = vmatpush2.bf16.msra.mxu1 %v2633_v46  ;;  %1263 = vmatpush2.bf16.msra.mxu0 %v2636_v48 }
  0x97   :  { %1071 = vmatprep.subr.bf16.mxu1 %v2647_v50  ;;  %1264 = vmatprep.subr.bf16.mxu0 %v2650_v51 }
  0x99   :  { %947 = vmatmul.mubr.bf16.gmra.mxu0 %v2879_v52  ;;  %1027 = vmatmul.mubr.bf16.gmra.mxu1 %v2881_v53 }
  0x9a   :  { %1072 = vmatpush2.bf16.msra.mxu1 %v2645_v56  ;;  %1265 = vmatpush2.bf16.msra.mxu0 %v2648_v57 }
  0x9b   :  { %1073 = vmatprep.subr.bf16.mxu1 %v2653_v58  ;;  %1266 = vmatprep.subr.bf16.mxu0 %v2656_v60 }
  0x9c   :  { %956 = vmatprep.mubr.bf16.mxu0 %v2657_v62  ;;  %1036 = vmatprep.mubr.bf16.mxu1 %v2883_v63 }
  0x9e   :  { %1074 = vmatpush2.bf16.msra.mxu1 %v2651_v0  ;;  %1267 = vmatpush2.bf16.msra.mxu0 %v2654_v1 }
  0x9f   :  { %1075 = vmatprep.subr.bf16.mxu1 %v2665_v4  ;;  %1268 = vmatprep.subr.bf16.mxu0 %v2668_v5 }
  0xa1   :  { %957 = vmatmul.mubr.bf16.gmra.mxu0 %v2661_v6  ;;  %1037 = vmatmul.mubr.bf16.gmra.mxu1 %v2888_v7 }
  0xa2   :  { %1076 = vmatpush2.bf16.msra.mxu1 %v2663_v10  ;;  %1269 = vmatpush2.bf16.msra.mxu0 %v2666_v11 }
  0xa3   :  { %1077 = vmatprep.subr.bf16.mxu1 %v2671_v12  ;;  %1270 = vmatprep.subr.bf16.mxu0 %v2674_v14 }
  0xa4   :  { %1079 = vmatprep.mubr.bf16.mxu1 %v2801_v13  ;;  %1272 = vmatprep.mubr.bf16.mxu0 %v2801_v13  ;;  %v184_v13 = vlaneseq }
  0xa6   :  { %1078 = vmatpush2.bf16.msra.mxu1 %v2669_v18  ;;  %1271 = vmatpush2.bf16.msra.mxu0 %v2672_v19 }
  0xa9   :  { %1080 = vmatmul.mubr.bf16.vlgmr.msra.gmra.mxu1 %v2807_v35  ;;  %1273 = vmatmul.mubr.bf16.vlgmr.msra.gmra.mxu0 %v2807_v35  ;;  %v185_v35 = vshrl.u32 %v184_v13, 7 }
  0xaa   :  { %1089 = vmatprep.mubr.bf16.mxu1 %v2811_v42  ;;  %1282 = vmatprep.mubr.bf16.mxu0 %v2811_v42 }
  0xab   :  { %v194_v42 = vsub.s32 2, %v185_v35 }
  0xb1   :  { %1090 = vmatmul.mubr.bf16.gmra.mxu1 %v2817_v47  ;;  %1283 = vmatmul.mubr.bf16.gmra.mxu0 %v2817_v47  ;;  %v202_v47 = vsub.s32 4, %v185_v35 }
  0xb2   :  { %1099 = vmatprep.mubr.bf16.mxu1 %v2823_v54  ;;  %1292 = vmatprep.mubr.bf16.mxu0 %v2823_v54  ;;  %v182_v54 = vld [vmem:[#allocation7] sm:$0x3f] }
  0xb9   :  { %1100 = vmatmul.mubr.bf16.gmra.mxu1 %v2829_v59  ;;  %1293 = vmatmul.mubr.bf16.gmra.mxu0 %v2829_v59  ;;  %v2921_v59 = vrot.slane %v182_v54, %v194_v42 }
  0xba   :  { %1109 = vmatprep.mubr.bf16.mxu1 %v2835_v2  ;;  %1302 = vmatprep.mubr.bf16.mxu0 %v2835_v2  ;;  %v2923_v2 = vrot.slane %v182_v54, %v202_v47 }
  0xc1   :  { %1110 = vmatmul.mubr.bf16.gmra.mxu1 %v2843_v8  ;;  %1303 = vmatmul.mubr.bf16.gmra.mxu0 %v2843_v8  ;;  %v198_v8 = vsub.s32 3, %v185_v35 }
  0xc2   :  { %1119 = vmatprep.mubr.bf16.mxu1 %v2847_v16  ;;  %1312 = vmatprep.mubr.bf16.mxu0 %v2847_v16  ;;  %v206_v16 = vsub.s32 5, %v185_v35 }
  0xc3   :  { %v2929_v20 = vrot.slane %v182_v54, %v198_v8 }
  0xc9   :  { %1120 = vmatmul.mubr.bf16.gmra.mxu1 %v2855_v22  ;;  %1313 = vmatmul.mubr.bf16.gmra.mxu0 %v2855_v22 }
  0xca   :  { %1129 = vmatprep.mubr.bf16.mxu1 %v2859_v28  ;;  %1322 = vmatprep.mubr.bf16.mxu0 %v2859_v28 }
  0xd1   :  { %1130 = vmatmul.mubr.bf16.gmra.mxu1 %v2867_v34  ;;  %1323 = vmatmul.mubr.bf16.gmra.mxu0 %v2867_v34 }
  0xd2   :  { %1139 = vmatprep.mubr.bf16.mxu1 %v2871_v44  ;;  %1332 = vmatprep.mubr.bf16.mxu0 %v2871_v44 }
  0xd9   :  { %1140 = vmatmul.mubr.bf16.gmra.mxu1 %v2879_v52  ;;  %1333 = vmatmul.mubr.bf16.gmra.mxu0 %v2879_v52 }
  0xda   :  { %1149 = vmatprep.mubr.bf16.mxu1 %v2657_v62  ;;  %1342 = vmatprep.mubr.bf16.mxu0 %v2657_v62 }
  0xe1   :  { %1150 = vmatmul.mubr.bf16.gmra.mxu1 %v2661_v6  ;;  %1343 = vmatmul.mubr.bf16.gmra.mxu0 %v2661_v6 }
  0xe2   :  { %1159 = vmatprep.mubr.bf16.mxu1 %v2803_v15  ;;  %1352 = vmatprep.mubr.bf16.mxu0 %v2803_v15  ;;  %v2931_v15 = vrot.slane %v182_v54, %v206_v16 }
  0xe9   :  { %1160 = vmatmul.mubr.bf16.gmra.mxu1 %v2809_v37  ;;  %1353 = vmatmul.mubr.bf16.gmra.mxu0 %v2809_v37  ;;  %v186_v37 = vsub.s32 0, %v185_v35 }
  0xea   :  { %1169 = vmatprep.mubr.bf16.mxu1 %v2813_v43  ;;  %1362 = vmatprep.mubr.bf16.mxu0 %v2813_v43  ;;  %v190_v43 = vsub.s32 1, %v185_v35 }
  0xf1   :  { %1170 = vmatmul.mubr.bf16.gmra.mxu1 %v2821_v49  ;;  %1363 = vmatmul.mubr.bf16.gmra.mxu0 %v2821_v49  ;;  %v2959_v49 = vrot.slane %v182_v54, %v186_v37 }
  0xf2   :  { %1179 = vmatprep.mubr.bf16.mxu1 %v2825_v55  ;;  %1372 = vmatprep.mubr.bf16.mxu0 %v2825_v55  ;;  %v2961_v55 = vrot.slane %v182_v54, %v190_v43 }
  0xf9   :  { %1180 = vmatmul.mubr.bf16.gmra.mxu1 %v2833_v61  ;;  %1373 = vmatmul.mubr.bf16.gmra.mxu0 %v2833_v61 }
  0xfa   :  { %1189 = vmatprep.mubr.bf16.mxu1 %v2837_v3  ;;  %1382 = vmatprep.mubr.bf16.mxu0 %v2837_v3 }
 0x101   :  { %1190 = vmatmul.mubr.bf16.gmra.mxu1 %v2845_v9  ;;  %1383 = vmatmul.mubr.bf16.gmra.mxu0 %v2845_v9 }
 0x102   :  { %1199 = vmatprep.mubr.bf16.mxu1 %v2849_v17  ;;  %1392 = vmatprep.mubr.bf16.mxu0 %v2849_v17 }
 0x109   :  { %1200 = vmatmul.mubr.bf16.gmra.mxu1 %v2857_v23  ;;  %1393 = vmatmul.mubr.bf16.gmra.mxu0 %v2857_v23 }
 0x10a   :  { %1209 = vmatprep.mubr.bf16.mxu1 %v2861_v29  ;;  %1402 = vmatprep.mubr.bf16.mxu0 %v2861_v29 }
 0x111   :  { %1210 = vmatmul.mubr.bf16.gmra.mxu1 %v2869_v36  ;;  %1403 = vmatmul.mubr.bf16.gmra.mxu0 %v2869_v36 }
 0x112   :  { %1219 = vmatprep.mubr.bf16.mxu1 %v2873_v45  ;;  %1412 = vmatprep.mubr.bf16.mxu0 %v2873_v45 }
 0x119   :  { %1220 = vmatmul.mubr.bf16.gmra.mxu1 %v2881_v53  ;;  %1413 = vmatmul.mubr.bf16.gmra.mxu0 %v2881_v53 }
 0x11a   :  { %1229 = vmatprep.mubr.bf16.mxu1 %v2883_v63  ;;  %1422 = vmatprep.mubr.bf16.mxu0 %v2883_v63 }
 0x121   :  { %1230 = vmatmul.mubr.bf16.gmra.mxu1 %v2888_v7  ;;  %1423 = vmatmul.mubr.bf16.gmra.mxu0 %v2888_v7 }
 0x129   :  { %v888_v61 = vpop.f32.mrf.mxu0  ;;  %v968_v3 = vpop.f32.mrf.mxu1 }
 0x12a   :  { %v889_v21 = vadd.f32 %v888_v61, %v2959_v49  ;;  %v969_v22 = vadd.f32 %v968_v3, %v2959_v49 }
 0x12b   :  { %v890_v9 = vpop.f32.mrf.mxu0  ;;  %v970_v17 = vpop.f32.mrf.mxu1 }
 0x12c   :  { %v891_v23 = vadd.f32 %v890_v9, %v2961_v55  ;;  %v971_v24 = vadd.f32 %v970_v17, %v2961_v55 }
 0x12d   :  { %v892_v25 = vpop.f32.mrf.mxu0  ;;  %v972_v26 = vpop.f32.mrf.mxu1 }
 0x12e   :  { %v2347_v27 = vpack.c.bf16 %v891_v23, %v889_v21  ;;  %v2395_v28 = vpack.c.bf16 %v971_v24, %v969_v22  ;;  %v893_v31 = vadd.f32 %v892_v25, %v2959_v49  ;;  %v973_v32 = vadd.f32 %v972_v26, %v2959_v49 }
 0x12f   :  { %v894_v29 = vpop.f32.mrf.mxu0  ;;  %v974_v30 = vpop.f32.mrf.mxu1 }
 0x130   :  { %2009 = vst [vmem:[#allocation8] sm:$0xff] %v2347_v27  ;;  %2057 = vst [vmem:[#allocation8 + $0x180] sm:$0xff] %v2395_v28  ;;  %v895_v33 = vadd.f32 %v894_v29, %v2961_v55  ;;  %v975_v34 = vadd.f32 %v974_v30, %v2961_v55 }
 0x131   :  { %v898_v36 = vpop.f32.mrf.mxu0  ;;  %v978_v38 = vpop.f32.mrf.mxu1 }
 0x132   :  { %v2350_v39 = vpack.c.bf16 %v895_v33, %v893_v31  ;;  %v2398_v40 = vpack.c.bf16 %v975_v34, %v973_v32  ;;  %v899_v45 = vadd.f32 %v898_v36, %v2959_v49  ;;  %v979_v46 = vadd.f32 %v978_v38, %v2959_v49 }
 0x133   :  { %v900_v41 = vpop.f32.mrf.mxu0  ;;  %v980_v44 = vpop.f32.mrf.mxu1 }
 0x134   :  { %2012 = vst [vmem:[#allocation8 + $0x18] sm:$0xff] %v2350_v39  ;;  %2060 = vst [vmem:[#allocation8 + $0x198] sm:$0xff] %v2398_v40  ;;  %v901_v48 = vadd.f32 %v900_v41, %v2961_v55  ;;  %v981_v50 = vadd.f32 %v980_v44, %v2961_v55 }
 0x135   :  { %v902_v51 = vpop.f32.mrf.mxu0  ;;  %v982_v52 = vpop.f32.mrf.mxu1 }
 0x136   :  { %v2353_v53 = vpack.c.bf16 %v901_v48, %v899_v45  ;;  %v2401_v56 = vpack.c.bf16 %v981_v50, %v979_v46  ;;  %v903_v60 = vadd.f32 %v902_v51, %v2959_v49  ;;  %v983_v62 = vadd.f32 %v982_v52, %v2959_v49 }
 0x137   :  { %v904_v57 = vpop.f32.mrf.mxu0  ;;  %v984_v58 = vpop.f32.mrf.mxu1 }
 0x138   :  { %2015 = vst [vmem:[#allocation8 + $0x30] sm:$0xff] %v2353_v53  ;;  %2063 = vst [vmem:[#allocation8 + $0x1b0] sm:$0xff] %v2401_v56  ;;  %v905_v63 = vadd.f32 %v904_v57, %v2961_v55  ;;  %v985_v0 = vadd.f32 %v984_v58, %v2961_v55 }
 0x139   :  { %v908_v1 = vpop.f32.mrf.mxu0  ;;  %v988_v4 = vpop.f32.mrf.mxu1 }
 0x13a   :  { %v2356_v5 = vpack.c.bf16 %v905_v63, %v903_v60  ;;  %v2404_v6 = vpack.c.bf16 %v985_v0, %v983_v62  ;;  %v909_v11 = vadd.f32 %v908_v1, %v2959_v49  ;;  %v989_v12 = vadd.f32 %v988_v4, %v2959_v49 }
 0x13b   :  { %v910_v7 = vpop.f32.mrf.mxu0  ;;  %v990_v10 = vpop.f32.mrf.mxu1 }
 0x13c   :  { %2018 = vst [vmem:[#allocation8 + $0x48] sm:$0xff] %v2356_v5  ;;  %2066 = vst [vmem:[#allocation8 + $0x1c8] sm:$0xff] %v2404_v6  ;;  %v911_v14 = vadd.f32 %v910_v7, %v2961_v55  ;;  %v991_v18 = vadd.f32 %v990_v10, %v2961_v55 }
 0x13d   :  { %v912_v19 = vpop.f32.mrf.mxu0  ;;  %v992_v13 = vpop.f32.mrf.mxu1 }
 0x13e   :  { %v2359_v35 = vpack.c.bf16 %v911_v14, %v909_v11  ;;  %v2407_v42 = vpack.c.bf16 %v991_v18, %v989_v12  ;;  %v913_v8 = vadd.f32 %v912_v19, %v2959_v49  ;;  %v993_v16 = vadd.f32 %v992_v13, %v2959_v49 }
 0x13f   :  { %v914_v47 = vpop.f32.mrf.mxu0  ;;  %v994_v54 = vpop.f32.mrf.mxu1 }
 0x140   :  { %2021 = vst [vmem:[#allocation8 + $0x60] sm:$0xff] %v2359_v35  ;;  %2069 = vst [vmem:[#allocation8 + $0x1e0] sm:$0xff] %v2407_v42  ;;  %v915_v37 = vadd.f32 %v914_v47, %v2961_v55  ;;  %v995_v43 = vadd.f32 %v994_v54, %v2961_v55 }
 0x141   :  { %v918_v61 = vpop.f32.mrf.mxu0  ;;  %v998_v3 = vpop.f32.mrf.mxu1 }
 0x142   :  { %v2362_v9 = vpack.c.bf16 %v915_v37, %v913_v8  ;;  %v2410_v17 = vpack.c.bf16 %v995_v43, %v993_v16  ;;  %v919_v23 = vadd.f32 %v918_v61, %v2959_v49  ;;  %v999_v24 = vadd.f32 %v998_v3, %v2959_v49 }
 0x143   :  { %v920_v21 = vpop.f32.mrf.mxu0  ;;  %v1000_v22 = vpop.f32.mrf.mxu1 }
 0x144   :  { %2024 = vst [vmem:[#allocation8 + $0x78] sm:$0xff] %v2362_v9  ;;  %2072 = vst [vmem:[#allocation8 + $0x1f8] sm:$0xff] %v2410_v17  ;;  %v921_v25 = vadd.f32 %v920_v21, %v2961_v55  ;;  %v1001_v26 = vadd.f32 %v1000_v22, %v2961_v55 }
 0x145   :  { %v922_v27 = vpop.f32.mrf.mxu0  ;;  %v1002_v28 = vpop.f32.mrf.mxu1 }
 0x146   :  { %v2365_v29 = vpack.c.bf16 %v921_v25, %v919_v23  ;;  %v2413_v30 = vpack.c.bf16 %v1001_v26, %v999_v24  ;;  %v923_v33 = vadd.f32 %v922_v27, %v2959_v49  ;;  %v1003_v34 = vadd.f32 %v1002_v28, %v2959_v49 }
 0x147   :  { %v924_v31 = vpop.f32.mrf.mxu0  ;;  %v1004_v32 = vpop.f32.mrf.mxu1 }
 0x148   :  { %2027 = vst [vmem:[#allocation8 + $0x90] sm:$0xff] %v2365_v29  ;;  %2075 = vst [vmem:[#allocation8 + $0x210] sm:$0xff] %v2413_v30  ;;  %v925_v36 = vadd.f32 %v924_v31, %v2961_v55  ;;  %v1005_v38 = vadd.f32 %v1004_v32, %v2961_v55 }
 0x149   :  { %v928_v39 = vpop.f32.mrf.mxu0  ;;  %v1008_v40 = vpop.f32.mrf.mxu1 }
 0x14a   :  { %v2368_v41 = vpack.c.bf16 %v925_v36, %v923_v33  ;;  %v2416_v44 = vpack.c.bf16 %v1005_v38, %v1003_v34  ;;  %v929_v48 = vadd.f32 %v928_v39, %v2959_v49  ;;  %v1009_v50 = vadd.f32 %v1008_v40, %v2959_v49 }
 0x14b   :  { %v930_v45 = vpop.f32.mrf.mxu0  ;;  %v1010_v46 = vpop.f32.mrf.mxu1 }
 0x14c   :  { %2030 = vst [vmem:[#allocation8 + $0xa8] sm:$0xff] %v2368_v41  ;;  %2078 = vst [vmem:[#allocation8 + $0x228] sm:$0xff] %v2416_v44  ;;  %v931_v51 = vadd.f32 %v930_v45, %v2961_v55  ;;  %v1011_v52 = vadd.f32 %v1010_v46, %v2961_v55 }
 0x14d   :  { %v932_v53 = vpop.f32.mrf.mxu0  ;;  %v1012_v56 = vpop.f32.mrf.mxu1 }
 0x14e   :  { %v2371_v57 = vpack.c.bf16 %v931_v51, %v929_v48  ;;  %v2419_v58 = vpack.c.bf16 %v1011_v52, %v1009_v50  ;;  %v933_v63 = vadd.f32 %v932_v53, %v2959_v49  ;;  %v1013_v0 = vadd.f32 %v1012_v56, %v2959_v49 }
 0x14f   :  { %v934_v60 = vpop.f32.mrf.mxu0  ;;  %v1014_v62 = vpop.f32.mrf.mxu1 }
 0x150   :  { %2033 = vst [vmem:[#allocation8 + $0xc0] sm:$0xff] %v2371_v57  ;;  %2081 = vst [vmem:[#allocation8 + $0x240] sm:$0xff] %v2419_v58  ;;  %v935_v1 = vadd.f32 %v934_v60, %v2961_v55  ;;  %v1015_v4 = vadd.f32 %v1014_v62, %v2961_v55 }
 0x151   :  { %v938_v5 = vpop.f32.mrf.mxu0  ;;  %v1018_v6 = vpop.f32.mrf.mxu1 }
 0x152   :  { %v2374_v7 = vpack.c.bf16 %v935_v1, %v933_v63  ;;  %v2422_v10 = vpack.c.bf16 %v1015_v4, %v1013_v0  ;;  %v939_v14 = vadd.f32 %v938_v5, %v2959_v49  ;;  %v1019_v18 = vadd.f32 %v1018_v6, %v2959_v49 }
 0x153   :  { %v940_v11 = vpop.f32.mrf.mxu0  ;;  %v1020_v12 = vpop.f32.mrf.mxu1 }
 0x154   :  { %2036 = vst [vmem:[#allocation8 + $0xd8] sm:$0xff] %v2374_v7  ;;  %2084 = vst [vmem:[#allocation8 + $0x258] sm:$0xff] %v2422_v10  ;;  %v941_v19 = vadd.f32 %v940_v11, %v2961_v55  ;;  %v1021_v13 = vadd.f32 %v1020_v12, %v2961_v55 }
 0x155   :  { %v942_v35 = vpop.f32.mrf.mxu0  ;;  %v1022_v42 = vpop.f32.mrf.mxu1 }
 0x156   :  { %v2377_v47 = vpack.c.bf16 %v941_v19, %v939_v14  ;;  %v2425_v54 = vpack.c.bf16 %v1021_v13, %v1019_v18  ;;  %v943_v37 = vadd.f32 %v942_v35, %v2959_v49  ;;  %v1023_v43 = vadd.f32 %v1022_v42, %v2959_v49 }
 0x157   :  { %v944_v8 = vpop.f32.mrf.mxu0  ;;  %v1024_v16 = vpop.f32.mrf.mxu1 }
 0x158   :  { %2039 = vst [vmem:[#allocation8 + $0xf0] sm:$0xff] %v2377_v47  ;;  %2087 = vst [vmem:[#allocation8 + $0x270] sm:$0xff] %v2425_v54  ;;  %v945_v61 = vadd.f32 %v944_v8, %v2961_v55  ;;  %v1025_v3 = vadd.f32 %v1024_v16, %v2961_v55 }
 0x159   :  { %v948_v9 = vpop.f32.mrf.mxu0  ;;  %v1028_v17 = vpop.f32.mrf.mxu1 }
 0x15a   :  { %v2380_v21 = vpack.c.bf16 %v945_v61, %v943_v37  ;;  %v2428_v22 = vpack.c.bf16 %v1025_v3, %v1023_v43  ;;  %v949_v25 = vadd.f32 %v948_v9, %v2959_v49  ;;  %v1029_v26 = vadd.f32 %v1028_v17, %v2959_v49 }
 0x15b   :  { %v950_v23 = vpop.f32.mrf.mxu0  ;;  %v1030_v24 = vpop.f32.mrf.mxu1 }
 0x15c   :  { %2042 = vst [vmem:[#allocation8 + $0x108] sm:$0xff] %v2380_v21  ;;  %2090 = vst [vmem:[#allocation8 + $0x288] sm:$0xff] %v2428_v22  ;;  %v951_v27 = vadd.f32 %v950_v23, %v2961_v55  ;;  %v1031_v28 = vadd.f32 %v1030_v24, %v2961_v55 }
 0x15d   :  { %v952_v29 = vpop.f32.mrf.mxu0  ;;  %v1032_v30 = vpop.f32.mrf.mxu1 }
 0x15e   :  { %v2383_v31 = vpack.c.bf16 %v951_v27, %v949_v25  ;;  %v2431_v32 = vpack.c.bf16 %v1031_v28, %v1029_v26  ;;  %v953_v36 = vadd.f32 %v952_v29, %v2959_v49  ;;  %v1033_v38 = vadd.f32 %v1032_v30, %v2959_v49 }
 0x15f   :  { %v954_v33 = vpop.f32.mrf.mxu0  ;;  %v1034_v34 = vpop.f32.mrf.mxu1 }
 0x160   :  { %2045 = vst [vmem:[#allocation8 + $0x120] sm:$0xff] %v2383_v31  ;;  %2093 = vst [vmem:[#allocation8 + $0x2a0] sm:$0xff] %v2431_v32  ;;  %v955_v39 = vadd.f32 %v954_v33, %v2961_v55  ;;  %v1035_v40 = vadd.f32 %v1034_v34, %v2961_v55 }
 0x161   :  { %v958_v41 = vpop.f32.mrf.mxu0  ;;  %v1038_v44 = vpop.f32.mrf.mxu1 }
 0x162   :  { %v2386_v45 = vpack.c.bf16 %v955_v39, %v953_v36  ;;  %v2434_v46 = vpack.c.bf16 %v1035_v40, %v1033_v38  ;;  %v959_v51 = vadd.f32 %v958_v41, %v2959_v49  ;;  %v1039_v52 = vadd.f32 %v1038_v44, %v2959_v49 }
 0x163   :  { %v960_v48 = vpop.f32.mrf.mxu0  ;;  %v1040_v50 = vpop.f32.mrf.mxu1 }
 0x164   :  { %2048 = vst [vmem:[#allocation8 + $0x138] sm:$0xff] %v2386_v45  ;;  %2096 = vst [vmem:[#allocation8 + $0x2b8] sm:$0xff] %v2434_v46  ;;  %v961_v53 = vadd.f32 %v960_v48, %v2961_v55  ;;  %v1041_v56 = vadd.f32 %v1040_v50, %v2961_v55 }
 0x165   :  { %v962_v57 = vpop.f32.mrf.mxu0  ;;  %v1042_v58 = vpop.f32.mrf.mxu1 }
 0x166   :  { %v2389_v60 = vpack.c.bf16 %v961_v53, %v959_v51  ;;  %v2437_v62 = vpack.c.bf16 %v1041_v56, %v1039_v52  ;;  %v963_v1 = vadd.f32 %v962_v57, %v2959_v49  ;;  %v1043_v4 = vadd.f32 %v1042_v58, %v2959_v49 }
 0x167   :  { %v964_v63 = vpop.f32.mrf.mxu0  ;;  %v1044_v0 = vpop.f32.mrf.mxu1 }
 0x168   :  { %2051 = vst [vmem:[#allocation8 + $0x150] sm:$0xff] %v2389_v60  ;;  %2099 = vst [vmem:[#allocation8 + $0x2d0] sm:$0xff] %v2437_v62  ;;  %v965_v5 = vadd.f32 %v964_v63, %v2961_v55  ;;  %v1045_v6 = vadd.f32 %v1044_v0, %v2961_v55 }
 0x169   :  { %v1081_v7 = vpop.f32.mrf.mxu1  ;;  %v1274_v10 = vpop.f32.mrf.mxu0 }
 0x16a   :  { %v2392_v11 = vpack.c.bf16 %v965_v5, %v963_v1  ;;  %v2440_v12 = vpack.c.bf16 %v1045_v6, %v1043_v4  ;;  %v1082_v19 = vadd.f32 %v1081_v7, %v2921_v59  ;;  %v1275_v13 = vadd.f32 %v1274_v10, %v2923_v2 }
 0x16b   :  { %v1083_v14 = vpop.f32.mrf.mxu1  ;;  %v1276_v18 = vpop.f32.mrf.mxu0 }
 0x16c   :  { %2054 = vst [vmem:[#allocation8 + $0x168] sm:$0xff] %v2392_v11  ;;  %2102 = vst [vmem:[#allocation8 + $0x2e8] sm:$0xff] %v2440_v12  ;;  %v1084_v35 = vadd.f32 %v1083_v14, %v2929_v20  ;;  %v1277_v49 = vadd.f32 %v1276_v18, %v2931_v15 }
 0x16d   :  { %v1085_v42 = vpop.f32.mrf.mxu1  ;;  %v1278_v47 = vpop.f32.mrf.mxu0 }
 0x16e   :  { %v2348_v54 = vpack.c.bf16 %v1084_v35, %v1082_v19  ;;  %v2349_v55 = vpack.c.bf16 %v1277_v49, %v1275_v13  ;;  %v1086_v37 = vadd.f32 %v1085_v42, %v2921_v59  ;;  %v1279_v43 = vadd.f32 %v1278_v47, %v2923_v2 }
 0x16f   :  { %v1087_v8 = vpop.f32.mrf.mxu1  ;;  %v1280_v16 = vpop.f32.mrf.mxu0 }
 0x170   :  { %2010 = vst [vmem:[#allocation8 + $0x8] sm:$0xff] %v2348_v54  ;;  %2011 = vst [vmem:[#allocation8 + $0x10] sm:$0xff] %v2349_v55  ;;  %v1088_v61 = vadd.f32 %v1087_v8, %v2929_v20  ;;  %v1281_v3 = vadd.f32 %v1280_v16, %v2931_v15 }
 0x171   :  { %v1091_v9 = vpop.f32.mrf.mxu1  ;;  %v1284_v17 = vpop.f32.mrf.mxu0 }
 0x172   :  { %v2351_v21 = vpack.c.bf16 %v1088_v61, %v1086_v37  ;;  %v2352_v22 = vpack.c.bf16 %v1281_v3, %v1279_v43  ;;  %v1092_v25 = vadd.f32 %v1091_v9, %v2921_v59  ;;  %v1285_v26 = vadd.f32 %v1284_v17, %v2923_v2 }
 0x173   :  { %v1093_v23 = vpop.f32.mrf.mxu1  ;;  %v1286_v24 = vpop.f32.mrf.mxu0 }
 0x174   :  { %2013 = vst [vmem:[#allocation8 + $0x20] sm:$0xff] %v2351_v21  ;;  %2014 = vst [vmem:[#allocation8 + $0x28] sm:$0xff] %v2352_v22  ;;  %v1094_v27 = vadd.f32 %v1093_v23, %v2929_v20  ;;  %v1287_v28 = vadd.f32 %v1286_v24, %v2931_v15 }
 0x175   :  { %v1095_v29 = vpop.f32.mrf.mxu1  ;;  %v1288_v30 = vpop.f32.mrf.mxu0 }
 0x176   :  { %v2354_v31 = vpack.c.bf16 %v1094_v27, %v1092_v25  ;;  %v2355_v32 = vpack.c.bf16 %v1287_v28, %v1285_v26  ;;  %v1096_v36 = vadd.f32 %v1095_v29, %v2921_v59  ;;  %v1289_v38 = vadd.f32 %v1288_v30, %v2923_v2 }
 0x177   :  { %v1097_v33 = vpop.f32.mrf.mxu1  ;;  %v1290_v34 = vpop.f32.mrf.mxu0 }
 0x178   :  { %2016 = vst [vmem:[#allocation8 + $0x38] sm:$0xff] %v2354_v31  ;;  %2017 = vst [vmem:[#allocation8 + $0x40] sm:$0xff] %v2355_v32  ;;  %v1098_v39 = vadd.f32 %v1097_v33, %v2929_v20  ;;  %v1291_v40 = vadd.f32 %v1290_v34, %v2931_v15 }
 0x179   :  { %v1101_v41 = vpop.f32.mrf.mxu1  ;;  %v1294_v44 = vpop.f32.mrf.mxu0 }
 0x17a   :  { %v2357_v45 = vpack.c.bf16 %v1098_v39, %v1096_v36  ;;  %v2358_v46 = vpack.c.bf16 %v1291_v40, %v1289_v38  ;;  %v1102_v51 = vadd.f32 %v1101_v41, %v2921_v59  ;;  %v1295_v52 = vadd.f32 %v1294_v44, %v2923_v2 }
 0x17b   :  { %v1103_v48 = vpop.f32.mrf.mxu1  ;;  %v1296_v50 = vpop.f32.mrf.mxu0 }
 0x17c   :  { %2019 = vst [vmem:[#allocation8 + $0x50] sm:$0xff] %v2357_v45  ;;  %2020 = vst [vmem:[#allocation8 + $0x58] sm:$0xff] %v2358_v46  ;;  %v1104_v53 = vadd.f32 %v1103_v48, %v2929_v20  ;;  %v1297_v56 = vadd.f32 %v1296_v50, %v2931_v15 }
 0x17d   :  { %v1105_v57 = vpop.f32.mrf.mxu1  ;;  %v1298_v58 = vpop.f32.mrf.mxu0 }
 0x17e   :  { %v2360_v60 = vpack.c.bf16 %v1104_v53, %v1102_v51  ;;  %v2361_v62 = vpack.c.bf16 %v1297_v56, %v1295_v52  ;;  %v1106_v1 = vadd.f32 %v1105_v57, %v2921_v59  ;;  %v1299_v4 = vadd.f32 %v1298_v58, %v2923_v2 }
 0x17f   :  { %v1107_v63 = vpop.f32.mrf.mxu1  ;;  %v1300_v0 = vpop.f32.mrf.mxu0 }
 0x180   :  { %2022 = vst [vmem:[#allocation8 + $0x68] sm:$0xff] %v2360_v60  ;;  %2023 = vst [vmem:[#allocation8 + $0x70] sm:$0xff] %v2361_v62  ;;  %v1108_v5 = vadd.f32 %v1107_v63, %v2929_v20  ;;  %v1301_v6 = vadd.f32 %v1300_v0, %v2931_v15 }
 0x181   :  { %v1111_v7 = vpop.f32.mrf.mxu1  ;;  %v1304_v10 = vpop.f32.mrf.mxu0 }
 0x182   :  { %v2363_v11 = vpack.c.bf16 %v1108_v5, %v1106_v1  ;;  %v2364_v12 = vpack.c.bf16 %v1301_v6, %v1299_v4  ;;  %v1112_v19 = vadd.f32 %v1111_v7, %v2921_v59  ;;  %v1305_v13 = vadd.f32 %v1304_v10, %v2923_v2 }
 0x183   :  { %v1113_v14 = vpop.f32.mrf.mxu1  ;;  %v1306_v18 = vpop.f32.mrf.mxu0 }
 0x184   :  { %2025 = vst [vmem:[#allocation8 + $0x80] sm:$0xff] %v2363_v11  ;;  %2026 = vst [vmem:[#allocation8 + $0x88] sm:$0xff] %v2364_v12  ;;  %v1114_v35 = vadd.f32 %v1113_v14, %v2929_v20  ;;  %v1307_v49 = vadd.f32 %v1306_v18, %v2931_v15 }
 0x185   :  { %v1115_v42 = vpop.f32.mrf.mxu1  ;;  %v1308_v47 = vpop.f32.mrf.mxu0 }
 0x186   :  { %v2366_v54 = vpack.c.bf16 %v1114_v35, %v1112_v19  ;;  %v2367_v55 = vpack.c.bf16 %v1307_v49, %v1305_v13  ;;  %v1116_v37 = vadd.f32 %v1115_v42, %v2921_v59  ;;  %v1309_v43 = vadd.f32 %v1308_v47, %v2923_v2 }
 0x187   :  { %v1117_v8 = vpop.f32.mrf.mxu1  ;;  %v1310_v16 = vpop.f32.mrf.mxu0 }
 0x188   :  { %2028 = vst [vmem:[#allocation8 + $0x98] sm:$0xff] %v2366_v54  ;;  %2029 = vst [vmem:[#allocation8 + $0xa0] sm:$0xff] %v2367_v55  ;;  %v1118_v61 = vadd.f32 %v1117_v8, %v2929_v20  ;;  %v1311_v3 = vadd.f32 %v1310_v16, %v2931_v15 }
 0x189   :  { %v1121_v9 = vpop.f32.mrf.mxu1  ;;  %v1314_v17 = vpop.f32.mrf.mxu0 }
 0x18a   :  { %v2369_v21 = vpack.c.bf16 %v1118_v61, %v1116_v37  ;;  %v2370_v22 = vpack.c.bf16 %v1311_v3, %v1309_v43  ;;  %v1122_v25 = vadd.f32 %v1121_v9, %v2921_v59  ;;  %v1315_v26 = vadd.f32 %v1314_v17, %v2923_v2 }
 0x18b   :  { %v1123_v23 = vpop.f32.mrf.mxu1  ;;  %v1316_v24 = vpop.f32.mrf.mxu0 }
 0x18c   :  { %2031 = vst [vmem:[#allocation8 + $0xb0] sm:$0xff] %v2369_v21  ;;  %2032 = vst [vmem:[#allocation8 + $0xb8] sm:$0xff] %v2370_v22  ;;  %v1124_v27 = vadd.f32 %v1123_v23, %v2929_v20  ;;  %v1317_v28 = vadd.f32 %v1316_v24, %v2931_v15 }
 0x18d   :  { %v1125_v29 = vpop.f32.mrf.mxu1  ;;  %v1318_v30 = vpop.f32.mrf.mxu0 }
 0x18e   :  { %v2372_v31 = vpack.c.bf16 %v1124_v27, %v1122_v25  ;;  %v2373_v32 = vpack.c.bf16 %v1317_v28, %v1315_v26  ;;  %v1126_v36 = vadd.f32 %v1125_v29, %v2921_v59  ;;  %v1319_v38 = vadd.f32 %v1318_v30, %v2923_v2 }
 0x18f   :  { %v1127_v33 = vpop.f32.mrf.mxu1  ;;  %v1320_v34 = vpop.f32.mrf.mxu0 }
 0x190   :  { %2034 = vst [vmem:[#allocation8 + $0xc8] sm:$0xff] %v2372_v31  ;;  %2035 = vst [vmem:[#allocation8 + $0xd0] sm:$0xff] %v2373_v32  ;;  %v1128_v39 = vadd.f32 %v1127_v33, %v2929_v20  ;;  %v1321_v40 = vadd.f32 %v1320_v34, %v2931_v15 }
 0x191   :  { %v1131_v41 = vpop.f32.mrf.mxu1  ;;  %v1324_v44 = vpop.f32.mrf.mxu0 }
 0x192   :  { %v2375_v45 = vpack.c.bf16 %v1128_v39, %v1126_v36  ;;  %v2376_v46 = vpack.c.bf16 %v1321_v40, %v1319_v38  ;;  %v1132_v51 = vadd.f32 %v1131_v41, %v2921_v59  ;;  %v1325_v52 = vadd.f32 %v1324_v44, %v2923_v2 }
 0x193   :  { %v1133_v48 = vpop.f32.mrf.mxu1  ;;  %v1326_v50 = vpop.f32.mrf.mxu0 }
 0x194   :  { %2037 = vst [vmem:[#allocation8 + $0xe0] sm:$0xff] %v2375_v45  ;;  %2038 = vst [vmem:[#allocation8 + $0xe8] sm:$0xff] %v2376_v46  ;;  %v1134_v53 = vadd.f32 %v1133_v48, %v2929_v20  ;;  %v1327_v56 = vadd.f32 %v1326_v50, %v2931_v15 }
 0x195   :  { %v1135_v57 = vpop.f32.mrf.mxu1  ;;  %v1328_v58 = vpop.f32.mrf.mxu0 }
 0x196   :  { %v2378_v60 = vpack.c.bf16 %v1134_v53, %v1132_v51  ;;  %v2379_v62 = vpack.c.bf16 %v1327_v56, %v1325_v52  ;;  %v1136_v1 = vadd.f32 %v1135_v57, %v2921_v59  ;;  %v1329_v4 = vadd.f32 %v1328_v58, %v2923_v2 }
 0x197   :  { %v1137_v63 = vpop.f32.mrf.mxu1  ;;  %v1330_v0 = vpop.f32.mrf.mxu0 }
 0x198   :  { %2040 = vst [vmem:[#allocation8 + $0xf8] sm:$0xff] %v2378_v60  ;;  %2041 = vst [vmem:[#allocation8 + $0x100] sm:$0xff] %v2379_v62  ;;  %v1138_v5 = vadd.f32 %v1137_v63, %v2929_v20  ;;  %v1331_v6 = vadd.f32 %v1330_v0, %v2931_v15 }
 0x199   :  { %v1141_v7 = vpop.f32.mrf.mxu1  ;;  %v1334_v10 = vpop.f32.mrf.mxu0 }
 0x19a   :  { %v2381_v11 = vpack.c.bf16 %v1138_v5, %v1136_v1  ;;  %v2382_v12 = vpack.c.bf16 %v1331_v6, %v1329_v4  ;;  %v1142_v19 = vadd.f32 %v1141_v7, %v2921_v59  ;;  %v1335_v13 = vadd.f32 %v1334_v10, %v2923_v2 }
 0x19b   :  { %v1143_v14 = vpop.f32.mrf.mxu1  ;;  %v1336_v18 = vpop.f32.mrf.mxu0 }
 0x19c   :  { %2043 = vst [vmem:[#allocation8 + $0x110] sm:$0xff] %v2381_v11  ;;  %2044 = vst [vmem:[#allocation8 + $0x118] sm:$0xff] %v2382_v12  ;;  %v1144_v35 = vadd.f32 %v1143_v14, %v2929_v20  ;;  %v1337_v49 = vadd.f32 %v1336_v18, %v2931_v15 }
 0x19d   :  { %v1145_v42 = vpop.f32.mrf.mxu1  ;;  %v1338_v47 = vpop.f32.mrf.mxu0 }
 0x19e   :  { %v2384_v54 = vpack.c.bf16 %v1144_v35, %v1142_v19  ;;  %v2385_v55 = vpack.c.bf16 %v1337_v49, %v1335_v13  ;;  %v1146_v37 = vadd.f32 %v1145_v42, %v2921_v59  ;;  %v1339_v43 = vadd.f32 %v1338_v47, %v2923_v2 }
 0x19f   :  { %v1147_v8 = vpop.f32.mrf.mxu1  ;;  %v1340_v16 = vpop.f32.mrf.mxu0 }
 0x1a0   :  { %2046 = vst [vmem:[#allocation8 + $0x128] sm:$0xff] %v2384_v54  ;;  %2047 = vst [vmem:[#allocation8 + $0x130] sm:$0xff] %v2385_v55  ;;  %v1148_v61 = vadd.f32 %v1147_v8, %v2929_v20  ;;  %v1341_v3 = vadd.f32 %v1340_v16, %v2931_v15 }
 0x1a1   :  { %v1151_v9 = vpop.f32.mrf.mxu1  ;;  %v1344_v17 = vpop.f32.mrf.mxu0 }
 0x1a2   :  { %v2387_v21 = vpack.c.bf16 %v1148_v61, %v1146_v37  ;;  %v2388_v22 = vpack.c.bf16 %v1341_v3, %v1339_v43  ;;  %v1152_v25 = vadd.f32 %v1151_v9, %v2921_v59  ;;  %v1345_v26 = vadd.f32 %v1344_v17, %v2923_v2 }
 0x1a3   :  { %v1153_v23 = vpop.f32.mrf.mxu1  ;;  %v1346_v24 = vpop.f32.mrf.mxu0 }
 0x1a4   :  { %2049 = vst [vmem:[#allocation8 + $0x140] sm:$0xff] %v2387_v21  ;;  %2050 = vst [vmem:[#allocation8 + $0x148] sm:$0xff] %v2388_v22  ;;  %v1154_v27 = vadd.f32 %v1153_v23, %v2929_v20  ;;  %v1347_v28 = vadd.f32 %v1346_v24, %v2931_v15 }
 0x1a5   :  { %v1155_v29 = vpop.f32.mrf.mxu1  ;;  %v1348_v30 = vpop.f32.mrf.mxu0 }
 0x1a6   :  { %v2390_v31 = vpack.c.bf16 %v1154_v27, %v1152_v25  ;;  %v2391_v32 = vpack.c.bf16 %v1347_v28, %v1345_v26  ;;  %v1156_v36 = vadd.f32 %v1155_v29, %v2921_v59  ;;  %v1349_v38 = vadd.f32 %v1348_v30, %v2923_v2 }
 0x1a7   :  { %v1157_v33 = vpop.f32.mrf.mxu1  ;;  %v1350_v34 = vpop.f32.mrf.mxu0 }
 0x1a8   :  { %2052 = vst [vmem:[#allocation8 + $0x158] sm:$0xff] %v2390_v31  ;;  %2053 = vst [vmem:[#allocation8 + $0x160] sm:$0xff] %v2391_v32  ;;  %v1158_v39 = vadd.f32 %v1157_v33, %v2929_v20  ;;  %v1351_v40 = vadd.f32 %v1350_v34, %v2931_v15 }
 0x1a9   :  { %v1161_v41 = vpop.f32.mrf.mxu1  ;;  %v1354_v44 = vpop.f32.mrf.mxu0 }
 0x1aa   :  { %v2393_v45 = vpack.c.bf16 %v1158_v39, %v1156_v36  ;;  %v2394_v46 = vpack.c.bf16 %v1351_v40, %v1349_v38  ;;  %v1162_v51 = vadd.f32 %v1161_v41, %v2921_v59  ;;  %v1355_v52 = vadd.f32 %v1354_v44, %v2923_v2 }
 0x1ab   :  { %v1163_v48 = vpop.f32.mrf.mxu1  ;;  %v1356_v50 = vpop.f32.mrf.mxu0 }
 0x1ac   :  { %2055 = vst [vmem:[#allocation8 + $0x170] sm:$0xff] %v2393_v45  ;;  %2056 = vst [vmem:[#allocation8 + $0x178] sm:$0xff] %v2394_v46  ;;  %v1164_v53 = vadd.f32 %v1163_v48, %v2929_v20  ;;  %v1357_v56 = vadd.f32 %v1356_v50, %v2931_v15 }
 0x1ad   :  { %v1165_v57 = vpop.f32.mrf.mxu1  ;;  %v1358_v58 = vpop.f32.mrf.mxu0 }
 0x1ae   :  { %v2396_v60 = vpack.c.bf16 %v1164_v53, %v1162_v51  ;;  %v2397_v62 = vpack.c.bf16 %v1357_v56, %v1355_v52  ;;  %v1166_v1 = vadd.f32 %v1165_v57, %v2921_v59  ;;  %v1359_v4 = vadd.f32 %v1358_v58, %v2923_v2 }
 0x1af   :  { %v1167_v63 = vpop.f32.mrf.mxu1  ;;  %v1360_v0 = vpop.f32.mrf.mxu0 }
 0x1b0   :  { %2058 = vst [vmem:[#allocation8 + $0x188] sm:$0xff] %v2396_v60  ;;  %2059 = vst [vmem:[#allocation8 + $0x190] sm:$0xff] %v2397_v62  ;;  %v1168_v5 = vadd.f32 %v1167_v63, %v2929_v20  ;;  %v1361_v6 = vadd.f32 %v1360_v0, %v2931_v15 }
 0x1b1   :  { %v1171_v7 = vpop.f32.mrf.mxu1  ;;  %v1364_v10 = vpop.f32.mrf.mxu0 }
 0x1b2   :  { %v2399_v11 = vpack.c.bf16 %v1168_v5, %v1166_v1  ;;  %v2400_v12 = vpack.c.bf16 %v1361_v6, %v1359_v4  ;;  %v1172_v19 = vadd.f32 %v1171_v7, %v2921_v59  ;;  %v1365_v13 = vadd.f32 %v1364_v10, %v2923_v2 }
 0x1b3   :  { %v1173_v14 = vpop.f32.mrf.mxu1  ;;  %v1366_v18 = vpop.f32.mrf.mxu0 }
 0x1b4   :  { %2061 = vst [vmem:[#allocation8 + $0x1a0] sm:$0xff] %v2399_v11  ;;  %2062 = vst [vmem:[#allocation8 + $0x1a8] sm:$0xff] %v2400_v12  ;;  %v1174_v35 = vadd.f32 %v1173_v14, %v2929_v20  ;;  %v1367_v49 = vadd.f32 %v1366_v18, %v2931_v15 }
 0x1b5   :  { %v1175_v42 = vpop.f32.mrf.mxu1  ;;  %v1368_v47 = vpop.f32.mrf.mxu0 }
 0x1b6   :  { %v2402_v54 = vpack.c.bf16 %v1174_v35, %v1172_v19  ;;  %v2403_v55 = vpack.c.bf16 %v1367_v49, %v1365_v13  ;;  %v1176_v37 = vadd.f32 %v1175_v42, %v2921_v59  ;;  %v1369_v43 = vadd.f32 %v1368_v47, %v2923_v2 }
 0x1b7   :  { %v1177_v8 = vpop.f32.mrf.mxu1  ;;  %v1370_v16 = vpop.f32.mrf.mxu0 }
 0x1b8   :  { %2064 = vst [vmem:[#allocation8 + $0x1b8] sm:$0xff] %v2402_v54  ;;  %2065 = vst [vmem:[#allocation8 + $0x1c0] sm:$0xff] %v2403_v55  ;;  %v1178_v61 = vadd.f32 %v1177_v8, %v2929_v20  ;;  %v1371_v3 = vadd.f32 %v1370_v16, %v2931_v15 }
 0x1b9   :  { %v1181_v9 = vpop.f32.mrf.mxu1  ;;  %v1374_v17 = vpop.f32.mrf.mxu0 }
 0x1ba   :  { %v2405_v21 = vpack.c.bf16 %v1178_v61, %v1176_v37  ;;  %v2406_v22 = vpack.c.bf16 %v1371_v3, %v1369_v43  ;;  %v1182_v25 = vadd.f32 %v1181_v9, %v2921_v59  ;;  %v1375_v26 = vadd.f32 %v1374_v17, %v2923_v2 }
 0x1bb   :  { %v1183_v23 = vpop.f32.mrf.mxu1  ;;  %v1376_v24 = vpop.f32.mrf.mxu0 }
 0x1bc   :  { %2067 = vst [vmem:[#allocation8 + $0x1d0] sm:$0xff] %v2405_v21  ;;  %2068 = vst [vmem:[#allocation8 + $0x1d8] sm:$0xff] %v2406_v22  ;;  %v1184_v27 = vadd.f32 %v1183_v23, %v2929_v20  ;;  %v1377_v28 = vadd.f32 %v1376_v24, %v2931_v15 }
 0x1bd   :  { %v1185_v29 = vpop.f32.mrf.mxu1  ;;  %v1378_v30 = vpop.f32.mrf.mxu0 }
 0x1be   :  { %v2408_v31 = vpack.c.bf16 %v1184_v27, %v1182_v25  ;;  %v2409_v32 = vpack.c.bf16 %v1377_v28, %v1375_v26  ;;  %v1186_v36 = vadd.f32 %v1185_v29, %v2921_v59  ;;  %v1379_v38 = vadd.f32 %v1378_v30, %v2923_v2 }
 0x1bf   :  { %v1187_v33 = vpop.f32.mrf.mxu1  ;;  %v1380_v34 = vpop.f32.mrf.mxu0 }
 0x1c0   :  { %2070 = vst [vmem:[#allocation8 + $0x1e8] sm:$0xff] %v2408_v31  ;;  %2071 = vst [vmem:[#allocation8 + $0x1f0] sm:$0xff] %v2409_v32  ;;  %v1188_v39 = vadd.f32 %v1187_v33, %v2929_v20  ;;  %v1381_v40 = vadd.f32 %v1380_v34, %v2931_v15 }
 0x1c1   :  { %v1191_v41 = vpop.f32.mrf.mxu1  ;;  %v1384_v44 = vpop.f32.mrf.mxu0 }
 0x1c2   :  { %v2411_v45 = vpack.c.bf16 %v1188_v39, %v1186_v36  ;;  %v2412_v46 = vpack.c.bf16 %v1381_v40, %v1379_v38  ;;  %v1192_v51 = vadd.f32 %v1191_v41, %v2921_v59  ;;  %v1385_v52 = vadd.f32 %v1384_v44, %v2923_v2 }
 0x1c3   :  { %v1193_v48 = vpop.f32.mrf.mxu1  ;;  %v1386_v50 = vpop.f32.mrf.mxu0 }
 0x1c4   :  { %2073 = vst [vmem:[#allocation8 + $0x200] sm:$0xff] %v2411_v45  ;;  %2074 = vst [vmem:[#allocation8 + $0x208] sm:$0xff] %v2412_v46  ;;  %v1194_v53 = vadd.f32 %v1193_v48, %v2929_v20  ;;  %v1387_v56 = vadd.f32 %v1386_v50, %v2931_v15 }
 0x1c5   :  { %v1195_v57 = vpop.f32.mrf.mxu1  ;;  %v1388_v58 = vpop.f32.mrf.mxu0 }
 0x1c6   :  { %v2414_v60 = vpack.c.bf16 %v1194_v53, %v1192_v51  ;;  %v2415_v62 = vpack.c.bf16 %v1387_v56, %v1385_v52  ;;  %v1196_v1 = vadd.f32 %v1195_v57, %v2921_v59  ;;  %v1389_v4 = vadd.f32 %v1388_v58, %v2923_v2 }
 0x1c7   :  { %v1197_v63 = vpop.f32.mrf.mxu1  ;;  %v1390_v0 = vpop.f32.mrf.mxu0 }
 0x1c8   :  { %2076 = vst [vmem:[#allocation8 + $0x218] sm:$0xff] %v2414_v60  ;;  %2077 = vst [vmem:[#allocation8 + $0x220] sm:$0xff] %v2415_v62  ;;  %v1198_v5 = vadd.f32 %v1197_v63, %v2929_v20  ;;  %v1391_v6 = vadd.f32 %v1390_v0, %v2931_v15 }
 0x1c9   :  { %v1201_v7 = vpop.f32.mrf.mxu1  ;;  %v1394_v10 = vpop.f32.mrf.mxu0 }
 0x1ca   :  { %v2417_v11 = vpack.c.bf16 %v1198_v5, %v1196_v1  ;;  %v2418_v12 = vpack.c.bf16 %v1391_v6, %v1389_v4  ;;  %v1202_v19 = vadd.f32 %v1201_v7, %v2921_v59  ;;  %v1395_v13 = vadd.f32 %v1394_v10, %v2923_v2 }
 0x1cb   :  { %v1203_v14 = vpop.f32.mrf.mxu1  ;;  %v1396_v18 = vpop.f32.mrf.mxu0 }
 0x1cc   :  { %2079 = vst [vmem:[#allocation8 + $0x230] sm:$0xff] %v2417_v11  ;;  %2080 = vst [vmem:[#allocation8 + $0x238] sm:$0xff] %v2418_v12  ;;  %v1204_v35 = vadd.f32 %v1203_v14, %v2929_v20  ;;  %v1397_v49 = vadd.f32 %v1396_v18, %v2931_v15 }
 0x1cd   :  { %v1205_v42 = vpop.f32.mrf.mxu1  ;;  %v1398_v47 = vpop.f32.mrf.mxu0 }
 0x1ce   :  { %v2420_v54 = vpack.c.bf16 %v1204_v35, %v1202_v19  ;;  %v2421_v55 = vpack.c.bf16 %v1397_v49, %v1395_v13  ;;  %v1206_v37 = vadd.f32 %v1205_v42, %v2921_v59  ;;  %v1399_v43 = vadd.f32 %v1398_v47, %v2923_v2 }
 0x1cf   :  { %v1207_v8 = vpop.f32.mrf.mxu1  ;;  %v1400_v16 = vpop.f32.mrf.mxu0 }
 0x1d0   :  { %2082 = vst [vmem:[#allocation8 + $0x248] sm:$0xff] %v2420_v54  ;;  %2083 = vst [vmem:[#allocation8 + $0x250] sm:$0xff] %v2421_v55  ;;  %v1208_v61 = vadd.f32 %v1207_v8, %v2929_v20  ;;  %v1401_v3 = vadd.f32 %v1400_v16, %v2931_v15 }
 0x1d1   :  { %v1211_v9 = vpop.f32.mrf.mxu1  ;;  %v1404_v17 = vpop.f32.mrf.mxu0 }
 0x1d2   :  { %v2423_v21 = vpack.c.bf16 %v1208_v61, %v1206_v37  ;;  %v2424_v22 = vpack.c.bf16 %v1401_v3, %v1399_v43  ;;  %v1212_v25 = vadd.f32 %v1211_v9, %v2921_v59  ;;  %v1405_v26 = vadd.f32 %v1404_v17, %v2923_v2 }
 0x1d3   :  { %v1213_v23 = vpop.f32.mrf.mxu1  ;;  %v1406_v24 = vpop.f32.mrf.mxu0 }
 0x1d4   :  { %2085 = vst [vmem:[#allocation8 + $0x260] sm:$0xff] %v2423_v21  ;;  %2086 = vst [vmem:[#allocation8 + $0x268] sm:$0xff] %v2424_v22  ;;  %v1214_v27 = vadd.f32 %v1213_v23, %v2929_v20  ;;  %v1407_v28 = vadd.f32 %v1406_v24, %v2931_v15 }
 0x1d5   :  { %v1215_v29 = vpop.f32.mrf.mxu1  ;;  %v1408_v30 = vpop.f32.mrf.mxu0 }
 0x1d6   :  { %v2426_v31 = vpack.c.bf16 %v1214_v27, %v1212_v25  ;;  %v2427_v32 = vpack.c.bf16 %v1407_v28, %v1405_v26  ;;  %v1216_v36 = vadd.f32 %v1215_v29, %v2921_v59  ;;  %v1409_v38 = vadd.f32 %v1408_v30, %v2923_v2 }
 0x1d7   :  { %v1217_v33 = vpop.f32.mrf.mxu1  ;;  %v1410_v34 = vpop.f32.mrf.mxu0 }
 0x1d8   :  { %2088 = vst [vmem:[#allocation8 + $0x278] sm:$0xff] %v2426_v31  ;;  %2089 = vst [vmem:[#allocation8 + $0x280] sm:$0xff] %v2427_v32  ;;  %v1218_v39 = vadd.f32 %v1217_v33, %v2929_v20  ;;  %v1411_v40 = vadd.f32 %v1410_v34, %v2931_v15 }
 0x1d9   :  { %v1221_v41 = vpop.f32.mrf.mxu1  ;;  %v1414_v44 = vpop.f32.mrf.mxu0 }
 0x1da   :  { %v2429_v45 = vpack.c.bf16 %v1218_v39, %v1216_v36  ;;  %v2430_v46 = vpack.c.bf16 %v1411_v40, %v1409_v38  ;;  %v1222_v51 = vadd.f32 %v1221_v41, %v2921_v59  ;;  %v1415_v52 = vadd.f32 %v1414_v44, %v2923_v2 }
 0x1db   :  { %v1223_v48 = vpop.f32.mrf.mxu1  ;;  %v1416_v50 = vpop.f32.mrf.mxu0 }
 0x1dc   :  { %2091 = vst [vmem:[#allocation8 + $0x290] sm:$0xff] %v2429_v45  ;;  %2092 = vst [vmem:[#allocation8 + $0x298] sm:$0xff] %v2430_v46  ;;  %v1224_v53 = vadd.f32 %v1223_v48, %v2929_v20  ;;  %v1417_v56 = vadd.f32 %v1416_v50, %v2931_v15 }
 0x1dd   :  { %v1225_v57 = vpop.f32.mrf.mxu1  ;;  %v1418_v58 = vpop.f32.mrf.mxu0 }
 0x1de   :  { %v2432_v60 = vpack.c.bf16 %v1224_v53, %v1222_v51  ;;  %v2433_v62 = vpack.c.bf16 %v1417_v56, %v1415_v52  ;;  %v1226_v1 = vadd.f32 %v1225_v57, %v2921_v59  ;;  %v1419_v4 = vadd.f32 %v1418_v58, %v2923_v2 }
 0x1df   :  { %v1227_v63 = vpop.f32.mrf.mxu1  ;;  %v1420_v0 = vpop.f32.mrf.mxu0 }
 0x1e0   :  { %2094 = vst [vmem:[#allocation8 + $0x2a8] sm:$0xff] %v2432_v60  ;;  %2095 = vst [vmem:[#allocation8 + $0x2b0] sm:$0xff] %v2433_v62  ;;  %v1228_v5 = vadd.f32 %v1227_v63, %v2929_v20  ;;  %v1421_v6 = vadd.f32 %v1420_v0, %v2931_v15 }
 0x1e1   :  { %v1231_v7 = vpop.f32.mrf.mxu1  ;;  %v1424_v10 = vpop.f32.mrf.mxu0 }
 0x1e2   :  { %v2435_v11 = vpack.c.bf16 %v1228_v5, %v1226_v1  ;;  %v2436_v12 = vpack.c.bf16 %v1421_v6, %v1419_v4  ;;  %v1232_v19 = vadd.f32 %v1231_v7, %v2921_v59  ;;  %v1425_v13 = vadd.f32 %v1424_v10, %v2923_v2 }
 0x1e3   :  { %v1233_v14 = vpop.f32.mrf.mxu1  ;;  %v1426_v18 = vpop.f32.mrf.mxu0 }
 0x1e4   :  { %2097 = vst [vmem:[#allocation8 + $0x2c0] sm:$0xff] %v2435_v11  ;;  %2098 = vst [vmem:[#allocation8 + $0x2c8] sm:$0xff] %v2436_v12  ;;  %v1234_v35 = vadd.f32 %v1233_v14, %v2929_v20  ;;  %v1427_v49 = vadd.f32 %v1426_v18, %v2931_v15 }
 0x1e5   :  { %v1235_v42 = vpop.f32.mrf.mxu1  ;;  %v1428_v47 = vpop.f32.mrf.mxu0 }
 0x1e6   :  { %v2438_v54 = vpack.c.bf16 %v1234_v35, %v1232_v19  ;;  %v2439_v55 = vpack.c.bf16 %v1427_v49, %v1425_v13  ;;  %v1236_v37 = vadd.f32 %v1235_v42, %v2921_v59  ;;  %v1429_v43 = vadd.f32 %v1428_v47, %v2923_v2 }
 0x1e7   :  { %v1237_v8 = vpop.f32.mrf.mxu1  ;;  %v1430_v16 = vpop.f32.mrf.mxu0 }
 0x1e8   :  { %2100 = vst [vmem:[#allocation8 + $0x2d8] sm:$0xff] %v2438_v54  ;;  %2101 = vst [vmem:[#allocation8 + $0x2e0] sm:$0xff] %v2439_v55  ;;  %v1238_v61 = vadd.f32 %v1237_v8, %v2929_v20  ;;  %v1431_v3 = vadd.f32 %v1430_v16, %v2931_v15 }
 0x1ea   :  { %v2441_v9 = vpack.c.bf16 %v1238_v61, %v1236_v37  ;;  %v2442_v17 = vpack.c.bf16 %v1431_v3, %v1429_v43 }
 0x1ec   :  { %2103 = vst [vmem:[#allocation8 + $0x2f0] sm:$0xff] %v2441_v9  ;;  %2104 = vst [vmem:[#allocation8 + $0x2f8] sm:$0xff] %v2442_v17 }
 0x1ed   :  { %2746 = shalt.err (!%p2743_p5)
}
 0x1ee   :  { %2116 = dma.vmem_to_hbm [thread:$0]  %s2111_s2, 12288, %s3164_s3, [#allocation4], %s2762_s15, %s2762_s15, %s2763_s16  }
 0x1ef   :  { %2759 = dma.done.wait [#allocation4], 12288  }
 0x1f0   :  { %2760 = vsyncadd [#allocation4], 4294955008 }
 0x1f1   :  { %2120 = vsyncpa [#allocation3], 1 }
 0x1f2   :  { %2121 = vsyncpa [#allocation6], 1 }
 0x1f3   :  { %2122 = vsyncpa [#allocation4], 1 }

</bundles_post_ra>
